<compile_context>
chip_gen: v5e
topology: v5e:2x2
jax: 0.10.0
libtpu: 0.0.40
codegen_flags: <defaults>
</compile_context>

<pallas_src>
import functools

import jax
import jax.numpy as jnp
from jax.experimental import pallas as pl
from jax.experimental.pallas import tpu as pltpu


_CONV_CFG = ((1, 1), (2, 0), (1, 1), (2, 0), (1, 1), (1, 0))   # (stride, pad)


# ----------------------------------------------------------------------------
# Pallas kernel 1: conv-as-matmul, lane-dense output (Cout x M), bias + ReLU
# ----------------------------------------------------------------------------
def _conv_mm_kernel(w_ref, col_ref, b_ref, o_ref):
    # (Cout, K) @ (K, tile_m) -> (Cout, tile_m); f32 accumulate, bias + ReLU.
    y = jnp.dot(w_ref[...], col_ref[...], preferred_element_type=jnp.float32)
    y = jnp.maximum(y + b_ref[...], 0.0)            # bias (Cout,1) -> lanes
    o_ref[...] = y.astype(o_ref.dtype)


def conv_matmul_pallas(w_flat, col, b_col):
    """w_flat: (Cout, K) bf16, col: (K, M) bf16, b_col: (Cout, 1) f32."""
    Cout, K = w_flat.shape
    Kc, M = col.shape
    assert K == Kc, (K, Kc)
    # 2-way lane split (keeps both v7x TensorCores busy) when the halves stay
    # 128-lane aligned; otherwise a single full-array block.
    if M % 2 == 0 and (M // 2) % 128 == 0:
        tile_m = M // 2
    else:
        tile_m = M
    grid = (M // tile_m,)
    return pl.pallas_call(
        _conv_mm_kernel,
        grid=grid,
        in_specs=[
            pl.BlockSpec((Cout, K), lambda m: (0, 0)),
            pl.BlockSpec((K, tile_m), lambda m: (0, m)),
            pl.BlockSpec((Cout, 1), lambda m: (0, 0)),
        ],
        out_specs=pl.BlockSpec((Cout, tile_m), lambda m: (0, m)),
        out_shape=jax.ShapeDtypeStruct((Cout, M), jnp.bfloat16),
        compiler_params=pltpu.CompilerParams(
            dimension_semantics=("parallel",)),
    )(w_flat, col, b_col)


# ----------------------------------------------------------------------------
# im2col in channels-major layout (glue; fused by XLA under jit)
# ----------------------------------------------------------------------------
def _im2col_cfirst(x, kh, kw, stride, pad):
    """x: (C, N, H, W) -> col (C*kh*kw, N*Ho*Wo); row order (C, kh, kw) matches
    PyTorch's weight.reshape(Cout, Cin*kh*kw) flattening."""
    C, N, H, W = x.shape
    if pad:
        x = jnp.pad(x, ((0, 0), (0, 0), (pad, pad), (pad, pad)))
    Hp, Wp = H + 2 * pad, W + 2 * pad
    Ho = (Hp - kh) // stride + 1
    Wo = (Wp - kw) // stride + 1
    taps = []
    for i in range(kh):
        for j in range(kw):
            taps.append(
                x[:, :,
                  i:i + stride * (Ho - 1) + 1:stride,
                  j:j + stride * (Wo - 1) + 1:stride])       # (C, N, Ho, Wo)
    col = jnp.stack(taps, axis=1)                            # (C, kh*kw, N, Ho, Wo)
    return col.reshape(C * kh * kw, N * Ho * Wo), Ho, Wo


def _conv_stack(x_nchw, conv_w, conv_b, conv_meta):
    """All samples (data + action) through the 6 conv+ReLU layers at once.
    Returns (N_total, channels*8) features."""
    x = jnp.transpose(x_nchw, (1, 0, 2, 3)).astype(jnp.bfloat16)  # (C, N, H, W)
    n = x.shape[1]
    for wf, bc, (kh, kw, stride, pad) in zip(conv_w, conv_b, conv_meta):
        col, Ho, Wo = _im2col_cfirst(x, kh, kw, stride, pad)
        y = conv_matmul_pallas(wf, col, bc)                  # (Cout, N*Ho*Wo)
        x = y.reshape(wf.shape[0], n, Ho, Wo)                # C-major for next layer
    return x.reshape(x.shape[0], -1).T                       # (N, Cout_last)


# ----------------------------------------------------------------------------
# Pallas kernel 2: encoder_net + broadcast/concat + action_net, fully fused.
# Activations (<= batch x 128) stay in VMEM/vregs for all 8 Linear layers.
# ----------------------------------------------------------------------------
def _mlp_kernel(enc_in_ref, act_rep_ref,
                we0, be0, we1, be1, we2, be2, we3, be3,
                wa0e, wa0a, ba0, wa1, ba1, wa2, ba2, wa3, ba3,
                o_ref):
    def lin(h, w_ref, b_ref, relu):
        y = jnp.dot(h.astype(jnp.bfloat16), w_ref[...],
                    preferred_element_type=jnp.float32) + b_ref[...]
        return jnp.maximum(y, 0.0) if relu else y

    # encoder_net: Linear+ReLU x3, then Linear.
    h = lin(enc_in_ref[...], we0, be0, True)
    h = lin(h, we1, be1, True)
    h = lin(h, we2, be2, True)
    enc_out = lin(h, we3, be3, False)                        # (1, H)

    # action_net layer 0: every row of encoder_stack equals enc_out, so
    # cat(enc_stack, act_rep) @ W0 == broadcast(enc_out @ W0_enc) + act_rep @ W0_act.
    a = (jnp.dot(enc_out.astype(jnp.bfloat16), wa0e[...],
                 preferred_element_type=jnp.float32)
         + jnp.dot(act_rep_ref[...], wa0a[...],
                   preferred_element_type=jnp.float32)
         + ba0[...])
    a = jnp.maximum(a, 0.0)
    a = lin(a, wa1, ba1, True)
    a = lin(a, wa2, ba2, True)
    out = lin(a, wa3, ba3, False)                            # (batch, 1)
    o_ref[...] = out.astype(o_ref.dtype)


def mlp_pallas(enc_in, act_rep, enc_layers, act_layers):
    batch = act_rep.shape[0]
    args = [enc_in, act_rep]
    for w, b in enc_layers:
        args += [w, b]
    wa0e, wa0a, ba0 = act_layers[0]
    args += [wa0e, wa0a, ba0]
    for w, b in act_layers[1:]:
        args += [w, b]
    return pl.pallas_call(
        _mlp_kernel,
        out_shape=jax.ShapeDtypeStruct((batch, 1), jnp.float32),
    )(*args)


# ----------------------------------------------------------------------------
# Parameters (PyTorch convention) + one-time kernel-layout preparation
# ----------------------------------------------------------------------------
def init_qnetwork_params(key, data_size, data_length, classes,
                         hidden_size=128, channels=8):
    in_c = data_size[0]
    out_kernal = int(data_size[-1] / 4)
    encoder_in = data_length * (channels * 8 + 2 * classes)
    action_in = hidden_size + channels * 8

    conv_shapes = [
        (channels,      in_c,          3, 3),
        (channels * 2,  channels,      2, 2),
        (channels * 2,  channels * 2,  3, 3),
        (channels * 4,  channels * 2,  2, 2),
        (channels * 4,  channels * 4,  3, 3),
        (channels * 8,  channels * 4,  out_kernal, out_kernal),
    ]
    enc_shapes = [(hidden_size, encoder_in)] + [(hidden_size, hidden_size)] * 3
    act_shapes = [(hidden_size, action_in)] + [(hidden_size, hidden_size)] * 2 \
        + [(1, hidden_size)]

    params = {"conv": [], "enc": [], "act": []}
    keys = jax.random.split(key, len(conv_shapes) + len(enc_shapes) + len(act_shapes))
    ki = 0
    for shp in conv_shapes:
        fan_in = shp[1] * shp[2] * shp[3]
        scale = 1.0 / jnp.sqrt(fan_in)
        w = jax.random.uniform(keys[ki], shp, jnp.float32, -scale, scale)
        b_ = jnp.zeros((shp[0],), jnp.float32)
        params["conv"].append((w, b_))
        ki += 1
    for name, shapes in (("enc", enc_shapes), ("act", act_shapes)):
        for shp in shapes:
            fan_in = shp[1]
            scale = 1.0 / jnp.sqrt(fan_in)
            w = jax.random.uniform(keys[ki], shp, jnp.float32, -scale, scale)
            b_ = jax.random.uniform(
                jax.random.fold_in(keys[ki], 1), (shp[0],), jnp.float32, -scale, scale)
            params[name].append((w, b_))
            ki += 1
    return params


def prepare_params(params):
    """One-time conversion to kernel-ready layout: conv weights flattened to
    (Cout, Cin*kh*kw) bf16 + bias (Cout,1) f32; linear weights transposed to
    (in,out) bf16 + bias (1,out) f32; action_net layer-0 weight pre-split into
    its encoder / conv-feature halves."""
    conv_w, conv_b, conv_meta = [], [], []
    for (w, b), (stride, pad) in zip(params["conv"], _CONV_CFG):
        cout, cin, kh, kw = w.shape
        conv_w.append(jnp.asarray(w.reshape(cout, cin * kh * kw), jnp.bfloat16))
        conv_b.append(jnp.asarray(b.reshape(cout, 1), jnp.float32))
        conv_meta.append((kh, kw, stride, pad))

    def lin(w, b):
        return (jnp.asarray(w.T, jnp.bfloat16),
                jnp.asarray(b.reshape(1, -1), jnp.float32))

    enc = [lin(w, b) for (w, b) in params["enc"]]
    act_raw = [lin(w, b) for (w, b) in params["act"]]
    hidden = params["enc"][0][0].shape[0]
    w0, b0 = act_raw[0]
    act = [(w0[:hidden, :], w0[hidden:, :], b0)] + act_raw[1:]

    kparams = {"conv_w": conv_w, "conv_b": conv_b, "enc": enc, "act": act}
    return kparams, tuple(conv_meta)


# ----------------------------------------------------------------------------
# Forward (matches QNetwork.forward semantics)
# ----------------------------------------------------------------------------
def qnetwork_forward(kparams, data, labels, preds, action, *,
                     conv_meta, data_length):
    if preds.ndim != 2:
        raise ValueError("Invalid preds size")
    if not (data.shape[0] == labels.shape[0] == preds.shape[0]):
        raise ValueError("Invalid knowledge shapes")
    if action.ndim != 4:
        raise ValueError("Invalid action size")

    # One conv stack over data + action batches (6 fused conv pallas_calls).
    x_all = jnp.concatenate([data, action], axis=0)
    feat = _conv_stack(x_all, kparams["conv_w"], kparams["conv_b"], conv_meta)
    data_rep = feat[:data_length]                      # (data_length, ch*8)
    action_rep = feat[data_length:]                    # (batch, ch*8)

    enc_in = jnp.concatenate(
        [data_rep, labels.astype(jnp.bfloat16), preds.astype(jnp.bfloat16)],
        axis=-1).reshape(1, -1)                        # (1, encoder_in)

    # encoder_net + broadcast + action_net: one fused pallas_call -> (batch,1)
    return mlp_pallas(enc_in, action_rep, kparams["enc"], kparams["act"])


# ----------------------------------------------------------------------------
if __name__ == "__main__":
    # Small, module-consistent shapes.
    data_size = (4, 16, 16)      # (C, H, W); out_kernal = 16 // 4 = 4
    data_length = 8
    classes = 4
    hidden_size = 128
    channels = 8
    batch = 2

    key = jax.random.PRNGKey(0)
    kp, kd, kl, kq, ka = jax.random.split(key, 5)

    raw_params = init_qnetwork_params(kp, data_size, data_length, classes,
                                      hidden_size=hidden_size, channels=channels)
    kparams, conv_meta = prepare_params(raw_params)

    data = jax.random.normal(kd, (data_length,) + data_size, jnp.float32)
    labels = jax.random.normal(kl, (data_length, classes), jnp.float32)
    preds = jax.random.normal(kq, (data_length, classes), jnp.float32)
    action = jax.random.normal(ka, (batch,) + data_size, jnp.float32)

    forward = jax.jit(functools.partial(
        qnetwork_forward, conv_meta=conv_meta, data_length=data_length))

    out = jax.block_until_ready(forward(kparams, data, labels, preds, action))
    assert out.shape == (batch, 1), out.shape
    assert bool(jnp.all(jnp.isfinite(out)))
    print("KERNEL_OK")
</pallas_src>

<mosaic_0001>
module attributes {stable_mosaic.version = 11 : i64} {
  func.func @_conv_mm_kernel(%arg0: i32, %arg1: memref<8x36xbf16, #tpu.memory_space<vmem>>, %arg2: memref<36x1280xbf16, #tpu.memory_space<vmem>>, %arg3: memref<8x1xf32, #tpu.memory_space<vmem>>, %arg4: memref<8x1280xbf16, #tpu.memory_space<vmem>>) attributes {dimension_semantics = [#tpu.dimension_semantics<parallel>], iteration_bounds = array<i64: 2>, scalar_prefetch = 0 : i64, scratch_operands = 0 : i64, tpu.core_type = #tpu.core_type<tc>, window_params = [{pipeline_mode = #tpu.pipeline_mode<synchronous>, transform_indices = @transform_0, window_bounds = array<i64: 8, 36>}, {transform_indices = @transform_1, window_bounds = array<i64: 36, 1280>}, {pipeline_mode = #tpu.pipeline_mode<synchronous>, transform_indices = @transform_2, window_bounds = array<i64: 8, 1>}, {transform_indices = @transform_3, window_bounds = array<i64: 8, 1280>}]} {
    %c0 = arith.constant 0 : index
    %c0_0 = arith.constant 0 : index
    %0 = vector.load %arg1[%c0, %c0_0] : memref<8x36xbf16, #tpu.memory_space<vmem>>, vector<8x36xbf16>
    %c0_1 = arith.constant 0 : index
    %c0_2 = arith.constant 0 : index
    %1 = vector.load %arg2[%c0_1, %c0_2] : memref<36x1280xbf16, #tpu.memory_space<vmem>>, vector<36x1280xbf16>
    %cst = arith.constant dense<0.000000e+00> : vector<8x1280xf32>
    %2 = tpu.matmul %0, %1, %cst {dimension_numbers = #tpu.dot_dimension_numbers<[1], [0], [0], [1], [0, 0, 1, 1], [], []>} : vector<8x36xbf16>, vector<36x1280xbf16>, vector<8x1280xf32> -> vector<8x1280xf32>
    %c0_3 = arith.constant 0 : index
    %c0_4 = arith.constant 0 : index
    %3 = vector.load %arg3[%c0_3, %c0_4] : memref<8x1xf32, #tpu.memory_space<vmem>>, vector<8x1xf32>
    %4 = vector.broadcast %3 : vector<8x1xf32> to vector<8x1280xf32>
    %5 = arith.addf %2, %4 : vector<8x1280xf32>
    %cst_5 = arith.constant 0.000000e+00 : f32
    %6 = vector.broadcast %cst_5 : f32 to vector<8x1280xf32>
    %7 = arith.maximumf %5, %6 : vector<8x1280xf32>
    %8 = arith.truncf %7 : vector<8x1280xf32> to vector<8x1280xbf16>
    %c0_6 = arith.constant 0 : index
    %c0_7 = arith.constant 0 : index
    %9 = vector.load %arg4[%c0_6, %c0_7] : memref<8x1280xbf16, #tpu.memory_space<vmem>>, vector<8x1280xbf16>
    tpu.vector_store %arg4[%c0_6, %c0_7], %8 {strides = array<i32>} : memref<8x1280xbf16, #tpu.memory_space<vmem>>, vector<8x1280xbf16>,
    return
  }
  func.func @transform_0(%arg0: i32) -> (i32, i32) {
    %c0_i32 = arith.constant 0 : i32
    %c0_i32_0 = arith.constant 0 : i32
    %c0_i32_1 = arith.constant 0 : i32
    return %c0_i32, %c0_i32_0 : i32, i32
  }
  func.func @transform_1(%arg0: i32) -> (i32, i32) {
    %c0_i32 = arith.constant 0 : i32
    %c0_i32_0 = arith.constant 0 : i32
    return %c0_i32, %arg0 : i32, i32
  }
  func.func @transform_2(%arg0: i32) -> (i32, i32) {
    %c0_i32 = arith.constant 0 : i32
    %c0_i32_0 = arith.constant 0 : i32
    %c0_i32_1 = arith.constant 0 : i32
    return %c0_i32, %c0_i32_0 : i32, i32
  }
  func.func @transform_3(%arg0: i32) -> (i32, i32) {
    %c0_i32 = arith.constant 0 : i32
    %c0_i32_0 = arith.constant 0 : i32
    return %c0_i32, %arg0 : i32, i32
  }
}

module attributes {stable_mosaic.version = 11 : i64} {
  func.func @_conv_mm_kernel(%arg0: i32, %arg1: memref<16x32xbf16, #tpu.memory_space<vmem>>, %arg2: memref<32x640xbf16, #tpu.memory_space<vmem>>, %arg3: memref<16x1xf32, #tpu.memory_space<vmem>>, %arg4: memref<16x640xbf16, #tpu.memory_space<vmem>>) attributes {dimension_semantics = [#tpu.dimension_semantics<parallel>], iteration_bounds = array<i64: 1>, scalar_prefetch = 0 : i64, scratch_operands = 0 : i64, tpu.core_type = #tpu.core_type<tc>, window_params = [{pipeline_mode = #tpu.pipeline_mode<synchronous>, transform_indices = @transform_0, window_bounds = array<i64: 16, 32>}, {transform_indices = @transform_1, window_bounds = array<i64: 32, 640>}, {pipeline_mode = #tpu.pipeline_mode<synchronous>, transform_indices = @transform_2, window_bounds = array<i64: 16, 1>}, {transform_indices = @transform_3, window_bounds = array<i64: 16, 640>}]} {
    %c0 = arith.constant 0 : index
    %c0_0 = arith.constant 0 : index
    %0 = vector.load %arg1[%c0, %c0_0] : memref<16x32xbf16, #tpu.memory_space<vmem>>, vector<16x32xbf16>
    %c0_1 = arith.constant 0 : index
    %c0_2 = arith.constant 0 : index
    %1 = vector.load %arg2[%c0_1, %c0_2] : memref<32x640xbf16, #tpu.memory_space<vmem>>, vector<32x640xbf16>
    %cst = arith.constant dense<0.000000e+00> : vector<16x640xf32>
    %2 = tpu.matmul %0, %1, %cst {dimension_numbers = #tpu.dot_dimension_numbers<[1], [0], [0], [1], [0, 0, 1, 1], [], []>} : vector<16x32xbf16>, vector<32x640xbf16>, vector<16x640xf32> -> vector<16x640xf32>
    %c0_3 = arith.constant 0 : index
    %c0_4 = arith.constant 0 : index
    %3 = vector.load %arg3[%c0_3, %c0_4] : memref<16x1xf32, #tpu.memory_space<vmem>>, vector<16x1xf32>
    %4 = vector.broadcast %3 : vector<16x1xf32> to vector<16x640xf32>
    %5 = arith.addf %2, %4 : vector<16x640xf32>
    %cst_5 = arith.constant 0.000000e+00 : f32
    %6 = vector.broadcast %cst_5 : f32 to vector<16x640xf32>
    %7 = arith.maximumf %5, %6 : vector<16x640xf32>
    %8 = arith.truncf %7 : vector<16x640xf32> to vector<16x640xbf16>
    %c0_6 = arith.constant 0 : index
    %c0_7 = arith.constant 0 : index
    %9 = vector.load %arg4[%c0_6, %c0_7] : memref<16x640xbf16, #tpu.memory_space<vmem>>, vector<16x640xbf16>
    tpu.vector_store %arg4[%c0_6, %c0_7], %8 {strides = array<i32>} : memref<16x640xbf16, #tpu.memory_space<vmem>>, vector<16x640xbf16>,
    return
  }
  func.func @transform_0(%arg0: i32) -> (i32, i32) {
    %c0_i32 = arith.constant 0 : i32
    %c0_i32_0 = arith.constant 0 : i32
    %c0_i32_1 = arith.constant 0 : i32
    return %c0_i32, %c0_i32_0 : i32, i32
  }
  func.func @transform_1(%arg0: i32) -> (i32, i32) {
    %c0_i32 = arith.constant 0 : i32
    %c0_i32_0 = arith.constant 0 : i32
    return %c0_i32, %arg0 : i32, i32
  }
  func.func @transform_2(%arg0: i32) -> (i32, i32) {
    %c0_i32 = arith.constant 0 : i32
    %c0_i32_0 = arith.constant 0 : i32
    %c0_i32_1 = arith.constant 0 : i32
    return %c0_i32, %c0_i32_0 : i32, i32
  }
  func.func @transform_3(%arg0: i32) -> (i32, i32) {
    %c0_i32 = arith.constant 0 : i32
    %c0_i32_0 = arith.constant 0 : i32
    return %c0_i32, %arg0 : i32, i32
  }
}

module attributes {stable_mosaic.version = 11 : i64} {
  func.func @_conv_mm_kernel(%arg0: i32, %arg1: memref<16x144xbf16, #tpu.memory_space<vmem>>, %arg2: memref<144x640xbf16, #tpu.memory_space<vmem>>, %arg3: memref<16x1xf32, #tpu.memory_space<vmem>>, %arg4: memref<16x640xbf16, #tpu.memory_space<vmem>>) attributes {dimension_semantics = [#tpu.dimension_semantics<parallel>], iteration_bounds = array<i64: 1>, scalar_prefetch = 0 : i64, scratch_operands = 0 : i64, tpu.core_type = #tpu.core_type<tc>, window_params = [{pipeline_mode = #tpu.pipeline_mode<synchronous>, transform_indices = @transform_0, window_bounds = array<i64: 16, 144>}, {transform_indices = @transform_1, window_bounds = array<i64: 144, 640>}, {pipeline_mode = #tpu.pipeline_mode<synchronous>, transform_indices = @transform_2, window_bounds = array<i64: 16, 1>}, {transform_indices = @transform_3, window_bounds = array<i64: 16, 640>}]} {
    %c0 = arith.constant 0 : index
    %c0_0 = arith.constant 0 : index
    %0 = vector.load %arg1[%c0, %c0_0] : memref<16x144xbf16, #tpu.memory_space<vmem>>, vector<16x144xbf16>
    %c0_1 = arith.constant 0 : index
    %c0_2 = arith.constant 0 : index
    %1 = vector.load %arg2[%c0_1, %c0_2] : memref<144x640xbf16, #tpu.memory_space<vmem>>, vector<144x640xbf16>
    %cst = arith.constant dense<0.000000e+00> : vector<16x640xf32>
    %2 = tpu.matmul %0, %1, %cst {dimension_numbers = #tpu.dot_dimension_numbers<[1], [0], [0], [1], [0, 0, 1, 1], [], []>} : vector<16x144xbf16>, vector<144x640xbf16>, vector<16x640xf32> -> vector<16x640xf32>
    %c0_3 = arith.constant 0 : index
    %c0_4 = arith.constant 0 : index
    %3 = vector.load %arg3[%c0_3, %c0_4] : memref<16x1xf32, #tpu.memory_space<vmem>>, vector<16x1xf32>
    %4 = vector.broadcast %3 : vector<16x1xf32> to vector<16x640xf32>
    %5 = arith.addf %2, %4 : vector<16x640xf32>
    %cst_5 = arith.constant 0.000000e+00 : f32
    %6 = vector.broadcast %cst_5 : f32 to vector<16x640xf32>
    %7 = arith.maximumf %5, %6 : vector<16x640xf32>
    %8 = arith.truncf %7 : vector<16x640xf32> to vector<16x640xbf16>
    %c0_6 = arith.constant 0 : index
    %c0_7 = arith.constant 0 : index
    %9 = vector.load %arg4[%c0_6, %c0_7] : memref<16x640xbf16, #tpu.memory_space<vmem>>, vector<16x640xbf16>
    tpu.vector_store %arg4[%c0_6, %c0_7], %8 {strides = array<i32>} : memref<16x640xbf16, #tpu.memory_space<vmem>>, vector<16x640xbf16>,
    return
  }
  func.func @transform_0(%arg0: i32) -> (i32, i32) {
    %c0_i32 = arith.constant 0 : i32
    %c0_i32_0 = arith.constant 0 : i32
    %c0_i32_1 = arith.constant 0 : i32
    return %c0_i32, %c0_i32_0 : i32, i32
  }
  func.func @transform_1(%arg0: i32) -> (i32, i32) {
    %c0_i32 = arith.constant 0 : i32
    %c0_i32_0 = arith.constant 0 : i32
    return %c0_i32, %arg0 : i32, i32
  }
  func.func @transform_2(%arg0: i32) -> (i32, i32) {
    %c0_i32 = arith.constant 0 : i32
    %c0_i32_0 = arith.constant 0 : i32
    %c0_i32_1 = arith.constant 0 : i32
    return %c0_i32, %c0_i32_0 : i32, i32
  }
  func.func @transform_3(%arg0: i32) -> (i32, i32) {
    %c0_i32 = arith.constant 0 : i32
    %c0_i32_0 = arith.constant 0 : i32
    return %c0_i32, %arg0 : i32, i32
  }
}

module attributes {stable_mosaic.version = 11 : i64} {
  func.func @_conv_mm_kernel(%arg0: i32, %arg1: memref<32x64xbf16, #tpu.memory_space<vmem>>, %arg2: memref<64x160xbf16, #tpu.memory_space<vmem>>, %arg3: memref<32x1xf32, #tpu.memory_space<vmem>>, %arg4: memref<32x160xbf16, #tpu.memory_space<vmem>>) attributes {dimension_semantics = [#tpu.dimension_semantics<parallel>], iteration_bounds = array<i64: 1>, scalar_prefetch = 0 : i64, scratch_operands = 0 : i64, tpu.core_type = #tpu.core_type<tc>, window_params = [{pipeline_mode = #tpu.pipeline_mode<synchronous>, transform_indices = @transform_0, window_bounds = array<i64: 32, 64>}, {transform_indices = @transform_1, window_bounds = array<i64: 64, 160>}, {pipeline_mode = #tpu.pipeline_mode<synchronous>, transform_indices = @transform_2, window_bounds = array<i64: 32, 1>}, {transform_indices = @transform_3, window_bounds = array<i64: 32, 160>}]} {
    %c0 = arith.constant 0 : index
    %c0_0 = arith.constant 0 : index
    %0 = vector.load %arg1[%c0, %c0_0] : memref<32x64xbf16, #tpu.memory_space<vmem>>, vector<32x64xbf16>
    %c0_1 = arith.constant 0 : index
    %c0_2 = arith.constant 0 : index
    %1 = vector.load %arg2[%c0_1, %c0_2] : memref<64x160xbf16, #tpu.memory_space<vmem>>, vector<64x160xbf16>
    %cst = arith.constant dense<0.000000e+00> : vector<32x160xf32>
    %2 = tpu.matmul %0, %1, %cst {dimension_numbers = #tpu.dot_dimension_numbers<[1], [0], [0], [1], [0, 0, 1, 1], [], []>} : vector<32x64xbf16>, vector<64x160xbf16>, vector<32x160xf32> -> vector<32x160xf32>
    %c0_3 = arith.constant 0 : index
    %c0_4 = arith.constant 0 : index
    %3 = vector.load %arg3[%c0_3, %c0_4] : memref<32x1xf32, #tpu.memory_space<vmem>>, vector<32x1xf32>
    %4 = vector.broadcast %3 : vector<32x1xf32> to vector<32x160xf32>
    %5 = arith.addf %2, %4 : vector<32x160xf32>
    %cst_5 = arith.constant 0.000000e+00 : f32
    %6 = vector.broadcast %cst_5 : f32 to vector<32x160xf32>
    %7 = arith.maximumf %5, %6 : vector<32x160xf32>
    %8 = arith.truncf %7 : vector<32x160xf32> to vector<32x160xbf16>
    %c0_6 = arith.constant 0 : index
    %c0_7 = arith.constant 0 : index
    %9 = vector.load %arg4[%c0_6, %c0_7] : memref<32x160xbf16, #tpu.memory_space<vmem>>, vector<32x160xbf16>
    tpu.vector_store %arg4[%c0_6, %c0_7], %8 {strides = array<i32>} : memref<32x160xbf16, #tpu.memory_space<vmem>>, vector<32x160xbf16>,
    return
  }
  func.func @transform_0(%arg0: i32) -> (i32, i32) {
    %c0_i32 = arith.constant 0 : i32
    %c0_i32_0 = arith.constant 0 : i32
    %c0_i32_1 = arith.constant 0 : i32
    return %c0_i32, %c0_i32_0 : i32, i32
  }
  func.func @transform_1(%arg0: i32) -> (i32, i32) {
    %c0_i32 = arith.constant 0 : i32
    %c0_i32_0 = arith.constant 0 : i32
    return %c0_i32, %arg0 : i32, i32
  }
  func.func @transform_2(%arg0: i32) -> (i32, i32) {
    %c0_i32 = arith.constant 0 : i32
    %c0_i32_0 = arith.constant 0 : i32
    %c0_i32_1 = arith.constant 0 : i32
    return %c0_i32, %c0_i32_0 : i32, i32
  }
  func.func @transform_3(%arg0: i32) -> (i32, i32) {
    %c0_i32 = arith.constant 0 : i32
    %c0_i32_0 = arith.constant 0 : i32
    return %c0_i32, %arg0 : i32, i32
  }
}

module attributes {stable_mosaic.version = 11 : i64} {
  func.func @_conv_mm_kernel(%arg0: i32, %arg1: memref<32x288xbf16, #tpu.memory_space<vmem>>, %arg2: memref<288x160xbf16, #tpu.memory_space<vmem>>, %arg3: memref<32x1xf32, #tpu.memory_space<vmem>>, %arg4: memref<32x160xbf16, #tpu.memory_space<vmem>>) attributes {dimension_semantics = [#tpu.dimension_semantics<parallel>], iteration_bounds = array<i64: 1>, scalar_prefetch = 0 : i64, scratch_operands = 0 : i64, tpu.core_type = #tpu.core_type<tc>, window_params = [{pipeline_mode = #tpu.pipeline_mode<synchronous>, transform_indices = @transform_0, window_bounds = array<i64: 32, 288>}, {transform_indices = @transform_1, window_bounds = array<i64: 288, 160>}, {pipeline_mode = #tpu.pipeline_mode<synchronous>, transform_indices = @transform_2, window_bounds = array<i64: 32, 1>}, {transform_indices = @transform_3, window_bounds = array<i64: 32, 160>}]} {
    %c0 = arith.constant 0 : index
    %c0_0 = arith.constant 0 : index
    %0 = vector.load %arg1[%c0, %c0_0] : memref<32x288xbf16, #tpu.memory_space<vmem>>, vector<32x288xbf16>
    %c0_1 = arith.constant 0 : index
    %c0_2 = arith.constant 0 : index
    %1 = vector.load %arg2[%c0_1, %c0_2] : memref<288x160xbf16, #tpu.memory_space<vmem>>, vector<288x160xbf16>
    %cst = arith.constant dense<0.000000e+00> : vector<32x160xf32>
    %2 = tpu.matmul %0, %1, %cst {dimension_numbers = #tpu.dot_dimension_numbers<[1], [0], [0], [1], [0, 0, 1, 1], [], []>} : vector<32x288xbf16>, vector<288x160xbf16>, vector<32x160xf32> -> vector<32x160xf32>
    %c0_3 = arith.constant 0 : index
    %c0_4 = arith.constant 0 : index
    %3 = vector.load %arg3[%c0_3, %c0_4] : memref<32x1xf32, #tpu.memory_space<vmem>>, vector<32x1xf32>
    %4 = vector.broadcast %3 : vector<32x1xf32> to vector<32x160xf32>
    %5 = arith.addf %2, %4 : vector<32x160xf32>
    %cst_5 = arith.constant 0.000000e+00 : f32
    %6 = vector.broadcast %cst_5 : f32 to vector<32x160xf32>
    %7 = arith.maximumf %5, %6 : vector<32x160xf32>
    %8 = arith.truncf %7 : vector<32x160xf32> to vector<32x160xbf16>
    %c0_6 = arith.constant 0 : index
    %c0_7 = arith.constant 0 : index
    %9 = vector.load %arg4[%c0_6, %c0_7] : memref<32x160xbf16, #tpu.memory_space<vmem>>, vector<32x160xbf16>
    tpu.vector_store %arg4[%c0_6, %c0_7], %8 {strides = array<i32>} : memref<32x160xbf16, #tpu.memory_space<vmem>>, vector<32x160xbf16>,
    return
  }
  func.func @transform_0(%arg0: i32) -> (i32, i32) {
    %c0_i32 = arith.constant 0 : i32
    %c0_i32_0 = arith.constant 0 : i32
    %c0_i32_1 = arith.constant 0 : i32
    return %c0_i32, %c0_i32_0 : i32, i32
  }
  func.func @transform_1(%arg0: i32) -> (i32, i32) {
    %c0_i32 = arith.constant 0 : i32
    %c0_i32_0 = arith.constant 0 : i32
    return %c0_i32, %arg0 : i32, i32
  }
  func.func @transform_2(%arg0: i32) -> (i32, i32) {
    %c0_i32 = arith.constant 0 : i32
    %c0_i32_0 = arith.constant 0 : i32
    %c0_i32_1 = arith.constant 0 : i32
    return %c0_i32, %c0_i32_0 : i32, i32
  }
  func.func @transform_3(%arg0: i32) -> (i32, i32) {
    %c0_i32 = arith.constant 0 : i32
    %c0_i32_0 = arith.constant 0 : i32
    return %c0_i32, %arg0 : i32, i32
  }
}

module attributes {stable_mosaic.version = 11 : i64} {
  func.func @_conv_mm_kernel(%arg0: i32, %arg1: memref<64x512xbf16, #tpu.memory_space<vmem>>, %arg2: memref<512x10xbf16, #tpu.memory_space<vmem>>, %arg3: memref<64x1xf32, #tpu.memory_space<vmem>>, %arg4: memref<64x10xbf16, #tpu.memory_space<vmem>>) attributes {dimension_semantics = [#tpu.dimension_semantics<parallel>], iteration_bounds = array<i64: 1>, scalar_prefetch = 0 : i64, scratch_operands = 0 : i64, tpu.core_type = #tpu.core_type<tc>, window_params = [{pipeline_mode = #tpu.pipeline_mode<synchronous>, transform_indices = @transform_0, window_bounds = array<i64: 64, 512>}, {transform_indices = @transform_1, window_bounds = array<i64: 512, 10>}, {pipeline_mode = #tpu.pipeline_mode<synchronous>, transform_indices = @transform_2, window_bounds = array<i64: 64, 1>}, {transform_indices = @transform_3, window_bounds = array<i64: 64, 10>}]} {
    %c0 = arith.constant 0 : index
    %c0_0 = arith.constant 0 : index
    %0 = vector.load %arg1[%c0, %c0_0] : memref<64x512xbf16, #tpu.memory_space<vmem>>, vector<64x512xbf16>
    %c0_1 = arith.constant 0 : index
    %c0_2 = arith.constant 0 : index
    %1 = vector.load %arg2[%c0_1, %c0_2] : memref<512x10xbf16, #tpu.memory_space<vmem>>, vector<512x10xbf16>
    %cst = arith.constant dense<0.000000e+00> : vector<64x10xf32>
    %2 = tpu.matmul %0, %1, %cst {dimension_numbers = #tpu.dot_dimension_numbers<[1], [0], [0], [1], [0, 0, 1, 1], [], []>} : vector<64x512xbf16>, vector<512x10xbf16>, vector<64x10xf32> -> vector<64x10xf32>
    %c0_3 = arith.constant 0 : index
    %c0_4 = arith.constant 0 : index
    %3 = vector.load %arg3[%c0_3, %c0_4] : memref<64x1xf32, #tpu.memory_space<vmem>>, vector<64x1xf32>
    %4 = vector.broadcast %3 : vector<64x1xf32> to vector<64x10xf32>
    %5 = arith.addf %2, %4 : vector<64x10xf32>
    %cst_5 = arith.constant 0.000000e+00 : f32
    %6 = vector.broadcast %cst_5 : f32 to vector<64x10xf32>
    %7 = arith.maximumf %5, %6 : vector<64x10xf32>
    %8 = arith.truncf %7 : vector<64x10xf32> to vector<64x10xbf16>
    %c0_6 = arith.constant 0 : index
    %c0_7 = arith.constant 0 : index
    %9 = vector.load %arg4[%c0_6, %c0_7] : memref<64x10xbf16, #tpu.memory_space<vmem>>, vector<64x10xbf16>
    tpu.vector_store %arg4[%c0_6, %c0_7], %8 {strides = array<i32>} : memref<64x10xbf16, #tpu.memory_space<vmem>>, vector<64x10xbf16>,
    return
  }
  func.func @transform_0(%arg0: i32) -> (i32, i32) {
    %c0_i32 = arith.constant 0 : i32
    %c0_i32_0 = arith.constant 0 : i32
    %c0_i32_1 = arith.constant 0 : i32
    return %c0_i32, %c0_i32_0 : i32, i32
  }
  func.func @transform_1(%arg0: i32) -> (i32, i32) {
    %c0_i32 = arith.constant 0 : i32
    %c0_i32_0 = arith.constant 0 : i32
    return %c0_i32, %arg0 : i32, i32
  }
  func.func @transform_2(%arg0: i32) -> (i32, i32) {
    %c0_i32 = arith.constant 0 : i32
    %c0_i32_0 = arith.constant 0 : i32
    %c0_i32_1 = arith.constant 0 : i32
    return %c0_i32, %c0_i32_0 : i32, i32
  }
  func.func @transform_3(%arg0: i32) -> (i32, i32) {
    %c0_i32 = arith.constant 0 : i32
    %c0_i32_0 = arith.constant 0 : i32
    return %c0_i32, %arg0 : i32, i32
  }
}

module attributes {stable_mosaic.version = 11 : i64} {
  func.func @_mlp_kernel(%arg0: memref<1x576xbf16, #tpu.memory_space<vmem>>, %arg1: memref<2x64xbf16, #tpu.memory_space<vmem>>, %arg2: memref<576x128xbf16, #tpu.memory_space<vmem>>, %arg3: memref<1x128xf32, #tpu.memory_space<vmem>>, %arg4: memref<128x128xbf16, #tpu.memory_space<vmem>>, %arg5: memref<1x128xf32, #tpu.memory_space<vmem>>, %arg6: memref<128x128xbf16, #tpu.memory_space<vmem>>, %arg7: memref<1x128xf32, #tpu.memory_space<vmem>>, %arg8: memref<128x128xbf16, #tpu.memory_space<vmem>>, %arg9: memref<1x128xf32, #tpu.memory_space<vmem>>, %arg10: memref<128x128xbf16, #tpu.memory_space<vmem>>, %arg11: memref<64x128xbf16, #tpu.memory_space<vmem>>, %arg12: memref<1x128xf32, #tpu.memory_space<vmem>>, %arg13: memref<128x128xbf16, #tpu.memory_space<vmem>>, %arg14: memref<1x128xf32, #tpu.memory_space<vmem>>, %arg15: memref<128x128xbf16, #tpu.memory_space<vmem>>, %arg16: memref<1x128xf32, #tpu.memory_space<vmem>>, %arg17: memref<128x1xbf16, #tpu.memory_space<vmem>>, %arg18: memref<1x1xf32, #tpu.memory_space<vmem>>, %arg19: memref<2x1xf32, #tpu.memory_space<vmem>>) attributes {dimension_semantics = [], scalar_prefetch = 0 : i64, scratch_operands = 0 : i64, tpu.core_type = #tpu.core_type<tc>} {
    %c0 = arith.constant 0 : index
    %c0_0 = arith.constant 0 : index
    %0 = vector.load %arg0[%c0, %c0_0] : memref<1x576xbf16, #tpu.memory_space<vmem>>, vector<1x576xbf16>
    %c0_1 = arith.constant 0 : index
    %c0_2 = arith.constant 0 : index
    %1 = vector.load %arg2[%c0_1, %c0_2] : memref<576x128xbf16, #tpu.memory_space<vmem>>, vector<576x128xbf16>
    %cst = arith.constant dense<0.000000e+00> : vector<1x128xf32>
    %2 = tpu.matmul %0, %1, %cst {dimension_numbers = #tpu.dot_dimension_numbers<[1], [0], [0], [1], [0, 0, 1, 1], [], []>} : vector<1x576xbf16>, vector<576x128xbf16>, vector<1x128xf32> -> vector<1x128xf32>
    %c0_3 = arith.constant 0 : index
    %c0_4 = arith.constant 0 : index
    %3 = vector.load %arg3[%c0_3, %c0_4] : memref<1x128xf32, #tpu.memory_space<vmem>>, vector<1x128xf32>
    %4 = arith.addf %2, %3 : vector<1x128xf32>
    %cst_5 = arith.constant 0.000000e+00 : f32
    %5 = vector.broadcast %cst_5 : f32 to vector<1x128xf32>
    %6 = arith.maximumf %4, %5 : vector<1x128xf32>
    %7 = arith.truncf %6 : vector<1x128xf32> to vector<1x128xbf16>
    %c0_6 = arith.constant 0 : index
    %c0_7 = arith.constant 0 : index
    %8 = vector.load %arg4[%c0_6, %c0_7] : memref<128x128xbf16, #tpu.memory_space<vmem>>, vector<128x128xbf16>
    %cst_8 = arith.constant dense<0.000000e+00> : vector<1x128xf32>
    %9 = tpu.matmul %7, %8, %cst_8 {dimension_numbers = #tpu.dot_dimension_numbers<[1], [0], [0], [1], [0, 0, 1, 1], [], []>} : vector<1x128xbf16>, vector<128x128xbf16>, vector<1x128xf32> -> vector<1x128xf32>
    %c0_9 = arith.constant 0 : index
    %c0_10 = arith.constant 0 : index
    %10 = vector.load %arg5[%c0_9, %c0_10] : memref<1x128xf32, #tpu.memory_space<vmem>>, vector<1x128xf32>
    %11 = arith.addf %9, %10 : vector<1x128xf32>
    %cst_11 = arith.constant 0.000000e+00 : f32
    %12 = vector.broadcast %cst_11 : f32 to vector<1x128xf32>
    %13 = arith.maximumf %11, %12 : vector<1x128xf32>
    %14 = arith.truncf %13 : vector<1x128xf32> to vector<1x128xbf16>
    %c0_12 = arith.constant 0 : index
    %c0_13 = arith.constant 0 : index
    %15 = vector.load %arg6[%c0_12, %c0_13] : memref<128x128xbf16, #tpu.memory_space<vmem>>, vector<128x128xbf16>
    %cst_14 = arith.constant dense<0.000000e+00> : vector<1x128xf32>
    %16 = tpu.matmul %14, %15, %cst_14 {dimension_numbers = #tpu.dot_dimension_numbers<[1], [0], [0], [1], [0, 0, 1, 1], [], []>} : vector<1x128xbf16>, vector<128x128xbf16>, vector<1x128xf32> -> vector<1x128xf32>
    %c0_15 = arith.constant 0 : index
    %c0_16 = arith.constant 0 : index
    %17 = vector.load %arg7[%c0_15, %c0_16] : memref<1x128xf32, #tpu.memory_space<vmem>>, vector<1x128xf32>
    %18 = arith.addf %16, %17 : vector<1x128xf32>
    %cst_17 = arith.constant 0.000000e+00 : f32
    %19 = vector.broadcast %cst_17 : f32 to vector<1x128xf32>
    %20 = arith.maximumf %18, %19 : vector<1x128xf32>
    %21 = arith.truncf %20 : vector<1x128xf32> to vector<1x128xbf16>
    %c0_18 = arith.constant 0 : index
    %c0_19 = arith.constant 0 : index
    %22 = vector.load %arg8[%c0_18, %c0_19] : memref<128x128xbf16, #tpu.memory_space<vmem>>, vector<128x128xbf16>
    %cst_20 = arith.constant dense<0.000000e+00> : vector<1x128xf32>
    %23 = tpu.matmul %21, %22, %cst_20 {dimension_numbers = #tpu.dot_dimension_numbers<[1], [0], [0], [1], [0, 0, 1, 1], [], []>} : vector<1x128xbf16>, vector<128x128xbf16>, vector<1x128xf32> -> vector<1x128xf32>
    %c0_21 = arith.constant 0 : index
    %c0_22 = arith.constant 0 : index
    %24 = vector.load %arg9[%c0_21, %c0_22] : memref<1x128xf32, #tpu.memory_space<vmem>>, vector<1x128xf32>
    %25 = arith.addf %23, %24 : vector<1x128xf32>
    %26 = arith.truncf %25 : vector<1x128xf32> to vector<1x128xbf16>
    %c0_23 = arith.constant 0 : index
    %c0_24 = arith.constant 0 : index
    %27 = vector.load %arg10[%c0_23, %c0_24] : memref<128x128xbf16, #tpu.memory_space<vmem>>, vector<128x128xbf16>
    %cst_25 = arith.constant dense<0.000000e+00> : vector<1x128xf32>
    %28 = tpu.matmul %26, %27, %cst_25 {dimension_numbers = #tpu.dot_dimension_numbers<[1], [0], [0], [1], [0, 0, 1, 1], [], []>} : vector<1x128xbf16>, vector<128x128xbf16>, vector<1x128xf32> -> vector<1x128xf32>
    %c0_26 = arith.constant 0 : index
    %c0_27 = arith.constant 0 : index
    %29 = vector.load %arg1[%c0_26, %c0_27] : memref<2x64xbf16, #tpu.memory_space<vmem>>, vector<2x64xbf16>
    %c0_28 = arith.constant 0 : index
    %c0_29 = arith.constant 0 : index
    %30 = vector.load %arg11[%c0_28, %c0_29] : memref<64x128xbf16, #tpu.memory_space<vmem>>, vector<64x128xbf16>
    %cst_30 = arith.constant dense<0.000000e+00> : vector<2x128xf32>
    %31 = tpu.matmul %29, %30, %cst_30 {dimension_numbers = #tpu.dot_dimension_numbers<[1], [0], [0], [1], [0, 0, 1, 1], [], []>} : vector<2x64xbf16>, vector<64x128xbf16>, vector<2x128xf32> -> vector<2x128xf32>
    %32 = vector.broadcast %28 : vector<1x128xf32> to vector<2x128xf32>
    %33 = arith.addf %32, %31 : vector<2x128xf32>
    %c0_31 = arith.constant 0 : index
    %c0_32 = arith.constant 0 : index
    %34 = vector.load %arg12[%c0_31, %c0_32] : memref<1x128xf32, #tpu.memory_space<vmem>>, vector<1x128xf32>
    %35 = vector.broadcast %34 : vector<1x128xf32> to vector<2x128xf32>
    %36 = arith.addf %33, %35 : vector<2x128xf32>
    %cst_33 = arith.constant 0.000000e+00 : f32
    %37 = vector.broadcast %cst_33 : f32 to vector<2x128xf32>
    %38 = arith.maximumf %36, %37 : vector<2x128xf32>
    %39 = arith.truncf %38 : vector<2x128xf32> to vector<2x128xbf16>
    %c0_34 = arith.constant 0 : index
    %c0_35 = arith.constant 0 : index
    %40 = vector.load %arg13[%c0_34, %c0_35] : memref<128x128xbf16, #tpu.memory_space<vmem>>, vector<128x128xbf16>
    %cst_36 = arith.constant dense<0.000000e+00> : vector<2x128xf32>
    %41 = tpu.matmul %39, %40, %cst_36 {dimension_numbers = #tpu.dot_dimension_numbers<[1], [0], [0], [1], [0, 0, 1, 1], [], []>} : vector<2x128xbf16>, vector<128x128xbf16>, vector<2x128xf32> -> vector<2x128xf32>
    %c0_37 = arith.constant 0 : index
    %c0_38 = arith.constant 0 : index
    %42 = vector.load %arg14[%c0_37, %c0_38] : memref<1x128xf32, #tpu.memory_space<vmem>>, vector<1x128xf32>
    %43 = vector.broadcast %42 : vector<1x128xf32> to vector<2x128xf32>
    %44 = arith.addf %41, %43 : vector<2x128xf32>
    %cst_39 = arith.constant 0.000000e+00 : f32
    %45 = vector.broadcast %cst_39 : f32 to vector<2x128xf32>
    %46 = arith.maximumf %44, %45 : vector<2x128xf32>
    %47 = arith.truncf %46 : vector<2x128xf32> to vector<2x128xbf16>
    %c0_40 = arith.constant 0 : index
    %c0_41 = arith.constant 0 : index
    %48 = vector.load %arg15[%c0_40, %c0_41] : memref<128x128xbf16, #tpu.memory_space<vmem>>, vector<128x128xbf16>
    %cst_42 = arith.constant dense<0.000000e+00> : vector<2x128xf32>
    %49 = tpu.matmul %47, %48, %cst_42 {dimension_numbers = #tpu.dot_dimension_numbers<[1], [0], [0], [1], [0, 0, 1, 1], [], []>} : vector<2x128xbf16>, vector<128x128xbf16>, vector<2x128xf32> -> vector<2x128xf32>
    %c0_43 = arith.constant 0 : index
    %c0_44 = arith.constant 0 : index
    %50 = vector.load %arg16[%c0_43, %c0_44] : memref<1x128xf32, #tpu.memory_space<vmem>>, vector<1x128xf32>
    %51 = vector.broadcast %50 : vector<1x128xf32> to vector<2x128xf32>
    %52 = arith.addf %49, %51 : vector<2x128xf32>
    %cst_45 = arith.constant 0.000000e+00 : f32
    %53 = vector.broadcast %cst_45 : f32 to vector<2x128xf32>
    %54 = arith.maximumf %52, %53 : vector<2x128xf32>
    %55 = arith.truncf %54 : vector<2x128xf32> to vector<2x128xbf16>
    %c0_46 = arith.constant 0 : index
    %c0_47 = arith.constant 0 : index
    %56 = vector.load %arg17[%c0_46, %c0_47] : memref<128x1xbf16, #tpu.memory_space<vmem>>, vector<128x1xbf16>
    %cst_48 = arith.constant dense<0.000000e+00> : vector<2x1xf32>
    %57 = tpu.matmul %55, %56, %cst_48 {dimension_numbers = #tpu.dot_dimension_numbers<[1], [0], [0], [1], [0, 0, 1, 1], [], []>} : vector<2x128xbf16>, vector<128x1xbf16>, vector<2x1xf32> -> vector<2x1xf32>
    %c0_49 = arith.constant 0 : index
    %c0_50 = arith.constant 0 : index
    %58 = vector.load %arg18[%c0_49, %c0_50] : memref<1x1xf32, #tpu.memory_space<vmem>>, vector<1x1xf32>
    %59 = vector.broadcast %58 : vector<1x1xf32> to vector<2x1xf32>
    %60 = arith.addf %57, %59 : vector<2x1xf32>
    %c0_51 = arith.constant 0 : index
    %c0_52 = arith.constant 0 : index
    %61 = vector.load %arg19[%c0_51, %c0_52] : memref<2x1xf32, #tpu.memory_space<vmem>>, vector<2x1xf32>
    tpu.vector_store %arg19[%c0_51, %c0_52], %60 {strides = array<i32>} : memref<2x1xf32, #tpu.memory_space<vmem>>, vector<2x1xf32>,
    return
  }
}

</mosaic_0001>

<bundles_post_ra>
// kernel: qnetwork_forward.7
= control target key start
LH: loop header
LB: loop body
LE: loop exit
PB: predicated region body
PF: predicated region fallthrough
CT: control target
= control target key end

     0   :  { %s839_s12 = smov 0   ;;  %s841_s13 = smov 0   ;;  %s1037_s0 = inlined_call_operand.vmem [shape: bf16[8,36], index: 0, kind: input, shape index: {}]   ;;  %s1038_s1 = inlined_call_operand.vmem [shape: bf16[36,2560], index: 1, kind: input, shape index: {}]   ;;  %s1039_s2 = inlined_call_operand.vmem [shape: f32[8,1], index: 2, kind: input, shape index: {}]   ;;  %s1040_s3 = inlined_call_operand.vmem [shape: bf16[8,2560], index: 3, kind: output, shape index: {}]  }
   0x1   :  { %s843_s14 = smov 0  }
   0x2 LB: > { %s646_s15 = sadd.s32 4294967295, %s816_s14   ;;  %s856_s16 = sadd.s32 1, %s816_s14   ;;  %s816_s14 = sphi %s843_s14, %s1043_s14   ;;  %s812_s13 = sphi %s841_s13, %s1042_s13   ;;  %s808_s12 = sphi %s839_s12, %s1041_s12  }
   0x3   : > { %s38_s17 = ssub.s32 %s816_s14, %s856_s16  ;;  %s41_s18 = sadd.s32 1, %s812_s13 }
   0x4   : > { %p39_p0 = scmp.eq.s32.totalorder %s38_s17, 0  ;;  %p48_p1 = scmp.ne.s32.totalorder %s812_s13, %s808_s12 }
   0x5   : > { %p49_p2 = scmp.eq.s32.totalorder %s816_s14, 0  ;;  %p649_p4 = scmp.ge.s32.totalorder %s816_s14, 2 }
   0x6   : > { %s865_s19 = scalar_select %p39_p0, %s812_s13, %s41_s18  }
   0x7   : > { %p50_p3 = por %p49_p2, %p48_p1  ;;  %127 = sbr.rel (%p649_p4) target bundleno = 42 (0x2a), region = 24 }
   0xc   : > { %130 = sbr.rel (!%p50_p3) target bundleno = 42 (0x2a), region = 28  ;;  %s132_s20 = sand.u32 (%p50_p3), 1, %s812_s13  }
   0xd   : > { %s745_s21 = smul.u32 (%p50_p3), 40, %s816_s14 }
   0xe   : > { %s766_s22 = smul.u32 (%p50_p3), 200, %s132_s20 }
   0xf   : > { %s873_s25 = scalar_lea.vmem (%p50_p3), %s1038_s1, %s745_s21 }
  0x10   : > { %v150_v0 = vld [vmem:[%s873_s25] sm:$0xff] (%p50_p3)  ;;  %v152_v1 = vld [vmem:[%s873_s25 + $0x8] sm:$0xff] (%p50_p3)  ;;  %v154_v2 = vld [vmem:[%s873_s25 + $0x10] sm:$0xff] (%p50_p3)  ;;  %s878_s26 = scalar_lea.vmem (%p50_p3), [#allocation2], %s766_s22 }
  0x11   : > { %151 = vst [vmem:[%s878_s26] sm:$0xff] %v150_v0  ;;  %v156_v3 = vld [vmem:[%s873_s25 + $0x18] sm:$0xff]  ;;  %v158_v4 = vld [vmem:[%s873_s25 + $0x20] sm:$0xff]  ;;  %v160_v5 = vld [vmem:[%s873_s25 + $0x50] sm:$0xff] }
  0x12   : > { %153 = vst [vmem:[%s878_s26 + $0x8] sm:$0xff] %v152_v1  ;;  %v162_v6 = vld [vmem:[%s873_s25 + $0x58] sm:$0xff]  ;;  %v164_v7 = vld [vmem:[%s873_s25 + $0x60] sm:$0xff]  ;;  %v166_v8 = vld [vmem:[%s873_s25 + $0x68] sm:$0xff] }
  0x13   : > { %155 = vst [vmem:[%s878_s26 + $0x10] sm:$0xff] %v154_v2  ;;  %v168_v9 = vld [vmem:[%s873_s25 + $0x70] sm:$0xff]  ;;  %v170_v10 = vld [vmem:[%s873_s25 + $0xa0] sm:$0xff]  ;;  %v172_v11 = vld [vmem:[%s873_s25 + $0xa8] sm:$0xff] }
  0x14   : > { %157 = vst [vmem:[%s878_s26 + $0x18] sm:$0xff] %v156_v3  ;;  %v174_v12 = vld [vmem:[%s873_s25 + $0xb0] sm:$0xff]  ;;  %v176_v13 = vld [vmem:[%s873_s25 + $0xb8] sm:$0xff]  ;;  %v178_v14 = vld [vmem:[%s873_s25 + $0xc0] sm:$0xff] }
  0x15   : > { %159 = vst [vmem:[%s878_s26 + $0x20] sm:$0xff] %v158_v4  ;;  %v180_v15 = vld [vmem:[%s873_s25 + $0xf0] sm:$0xff]  ;;  %v182_v16 = vld [vmem:[%s873_s25 + $0xf8] sm:$0xff]  ;;  %v184_v17 = vld [vmem:[%s873_s25 + $0x100] sm:$0xff] }
  0x16   : > { %161 = vst [vmem:[%s878_s26 + $0x28] sm:$0xff] %v160_v5  ;;  %v186_v18 = vld [vmem:[%s873_s25 + $0x108] sm:$0xff]  ;;  %v188_v19 = vld [vmem:[%s873_s25 + $0x110] sm:$0xff]  ;;  %v190_v20 = vld [vmem:[%s873_s25 + $0x140] sm:$0xff] }
  0x17   : > { %163 = vst [vmem:[%s878_s26 + $0x30] sm:$0xff] %v162_v6  ;;  %v192_v21 = vld [vmem:[%s873_s25 + $0x148] sm:$0xff]  ;;  %v194_v22 = vld [vmem:[%s873_s25 + $0x150] sm:$0xff]  ;;  %v196_v23 = vld [vmem:[%s873_s25 + $0x158] sm:$0xff] }
  0x18   : > { %165 = vst [vmem:[%s878_s26 + $0x38] sm:$0xff] %v164_v7  ;;  %v198_v24 = vld [vmem:[%s873_s25 + $0x160] sm:$0xff] }
  0x19   : > { %167 = vst [vmem:[%s878_s26 + $0x40] sm:$0xff] %v166_v8 }
  0x1a   : > { %169 = vst [vmem:[%s878_s26 + $0x48] sm:$0xff] %v168_v9 }
  0x1b   : > { %171 = vst [vmem:[%s878_s26 + $0x50] sm:$0xff] %v170_v10 }
  0x1c   : > { %173 = vst [vmem:[%s878_s26 + $0x58] sm:$0xff] %v172_v11 }
  0x1d   : > { %175 = vst [vmem:[%s878_s26 + $0x60] sm:$0xff] %v174_v12 }
  0x1e   : > { %177 = vst [vmem:[%s878_s26 + $0x68] sm:$0xff] %v176_v13 }
  0x1f   : > { %179 = vst [vmem:[%s878_s26 + $0x70] sm:$0xff] %v178_v14 }
  0x20   : > { %181 = vst [vmem:[%s878_s26 + $0x78] sm:$0xff] %v180_v15 }
  0x21   : > { %183 = vst [vmem:[%s878_s26 + $0x80] sm:$0xff] %v182_v16 }
  0x22   : > { %185 = vst [vmem:[%s878_s26 + $0x88] sm:$0xff] %v184_v17 }
  0x23   : > { %187 = vst [vmem:[%s878_s26 + $0x90] sm:$0xff] %v186_v18 }
  0x24   : > { %189 = vst [vmem:[%s878_s26 + $0x98] sm:$0xff] %v188_v19 }
  0x25   : > { %191 = vst [vmem:[%s878_s26 + $0xa0] sm:$0xff] %v190_v20 }
  0x26   : > { %193 = vst [vmem:[%s878_s26 + $0xa8] sm:$0xff] %v192_v21 }
  0x27   : > { %195 = vst [vmem:[%s878_s26 + $0xb0] sm:$0xff] %v194_v22 }
  0x28   : > { %197 = vst [vmem:[%s878_s26 + $0xb8] sm:$0xff] %v196_v23 }
  0x29   : > { %199 = vst [vmem:[%s878_s26 + $0xc0] sm:$0xff] %v198_v24 }
  0x2a PF: > { %p651_p5 = scmp.ge.s32.totalorder %s816_s14, 1  ;;  %p204_p6 = scmp.lt.s32.totalorder %s816_s14, 3 }
  0x2c   : > { %p205_p7 = pnand %p651_p5, %p204_p6 }
  0x2d   : > { %s211_s27 = sand.u32 (!%p205_p7), 1, %s808_s12   ;;  %s235_s7 = smul.u32 (!%p205_p7), 10, %s646_s15 }
  0x2e   : > { %208 = sbr.rel (%p205_p7) target bundleno = 235 (0xeb), region = 51 }
  0x2f   : > { %s767_s28 = smul.u32 (!%p205_p7), 200, %s211_s27  ;;  %p236_p8 = scmp.lt.s32.totalorder (!%p205_p7), %s235_s7, 19 }
  0x31   : > { %s933_s4 = scalar_lea.vmem (!%p205_p7), [#allocation2], %s767_s28 }
  0x33   : > { %v818_v25 = vmov 0   ;;  %v268_v26 = vld [vmem:[%s1039_s2] sm:$0xff]  ;;  %v264_v28 = vld [vmem:[%s933_s4 + $0xa8] sm:$0x33]  ;;  %vm403_vm0 = vcmask 1041408   ;;  %vm399_vm1 = vcmask 293888  }
  0x34   : > { %793 = vset.pattern.permute.xlu0 %v818_v25  ;;  %v263_v27 = vld [vmem:[%s933_s4 + $0xa0] sm:$0x33]  ;;  %v341_v31 = vunpack.c.l.b16 %v264_v28  ;;  %v342_v32 = vunpack.c.h.b16 %v264_v28  ;;  %v695_v33 = vld [vmem:[%s933_s4 + $0x50] sm:$0xf]  ;;  %v761_v34 = vld [vmem:[%s933_s4 + $0x74] sm:$0xf0] }
  0x35   : > { %271 = vperm.xlu0 %793, %v268_v26   ;;  %v339_v29 = vunpack.c.l.b16 %v263_v27  ;;  %v340_v30 = vunpack.c.h.b16 %v263_v27  ;;  %v756_v39 = vld [vmem:[%s933_s4 + $0x54] sm:$0xf]  ;;  %v697_v40 = vld [vmem:[%s933_s4 + $0x78] sm:$0xf0]  ;;  %v703_v41 = vld [vmem:[%s933_s4 + $0x58] sm:$0xf]  ;;  %v696_v50 = vor.u32 %v761_v34, %v695_v33 }
  0x36   : > { %v371_v37 = vpack.c.b16 %v341_v31, %v341_v31  ;;  %v372_v38 = vpack.c.b16 %v342_v32, %v342_v32  ;;  %v762_v42 = vld [vmem:[%s933_s4 + $0x7c] sm:$0xf0]  ;;  %v757_v43 = vld [vmem:[%s933_s4 + $0x5c] sm:$0xf]  ;;  %v705_v44 = vld [vmem:[%s933_s4 + $0x80] sm:$0xf0]  ;;  %v700_v51 = vor.u32 %v756_v39, %v697_v40 }
  0x37   : > { %v369_v35 = vpack.c.b16 %v339_v29, %v339_v29  ;;  %v370_v36 = vpack.c.b16 %v340_v30, %v340_v30  ;;  %v655_v49 = vld [vmem:[%s933_s4] sm:$0xf]  ;;  %v751_v52 = vld [vmem:[%s933_s4 + $0x24] sm:$0xf0]  ;;  %v746_v53 = vld [vmem:[%s933_s4 + $0x4] sm:$0xf]  ;;  %v704_v55 = vor.u32 %v762_v42, %v703_v41  ;;  %v708_v56 = vor.u32 %v757_v43, %v705_v44 }
  0x38   : > { %v411_v47 = vsel %vm403_vm0, %v371_v37, 0  ;;  %v414_v48 = vsel %vm403_vm0, %v372_v38, 0  ;;  %v265_v54 = vld [vmem:[%s933_s4 + $0xb0] sm:$0x33]  ;;  %v657_v57 = vld [vmem:[%s933_s4 + $0x28] sm:$0xf0]  ;;  %v656_v4 = vor.u32 %v751_v52, %v655_v49 }
  0x39   : > { %v405_v45 = vsel %vm403_vm0, %v369_v35, 0  ;;  %v408_v46 = vsel %vm403_vm0, %v370_v36, 0  ;;  %465 = vmatpush.bf16.msra.mxu2 %v411_v47  ;;  %478 = vmatpush.bf16.msra.mxu3 %v414_v48  ;;  %v663_v58 = vld [vmem:[%s933_s4 + $0x8] sm:$0xf]  ;;  %v752_v59 = vld [vmem:[%s933_s4 + $0x2c] sm:$0xf0]  ;;  %v343_v60 = vunpack.c.l.b16 %v265_v54  ;;  %v344_v61 = vunpack.c.h.b16 %v265_v54 }
  0x3a   : > { %439 = vmatpush.bf16.msra.mxu0 %v405_v45  ;;  %452 = vmatpush.bf16.msra.mxu1 %v408_v46  ;;  %v747_v62 = vld [vmem:[%s933_s4 + $0xc] sm:$0xf]  ;;  %v665_v63 = vld [vmem:[%s933_s4 + $0x30] sm:$0xf0]  ;;  %v266_v0 = vld [vmem:[%s933_s4 + $0xb8] sm:$0x33]  ;;  %v660_v5 = vor.u32 %v746_v53, %v657_v57  ;;  %v664_v7 = vor.u32 %v752_v59, %v663_v58 }
  0x3b   : > { %v373_v1 = vpack.c.b16 %v343_v60, %v343_v60  ;;  %v374_v2 = vpack.c.b16 %v344_v61, %v344_v61  ;;  %v345_v3 = vunpack.c.l.b16 %v266_v0  ;;  %v346_v6 = vunpack.c.h.b16 %v266_v0  ;;  %v711_v9 = vld [vmem:[%s933_s4 + $0x60] sm:$0xf]  ;;  %v763_v10 = vld [vmem:[%s933_s4 + $0x84] sm:$0xf0]  ;;  %v758_v11 = vld [vmem:[%s933_s4 + $0x64] sm:$0xf] }
  0x3c   : > { %v668_v8 = vor.u32 %v747_v62, %v665_v63  ;;  %v713_v16 = vld [vmem:[%s933_s4 + $0x88] sm:$0xf0]  ;;  %v267_v17 = vld [vmem:[%s933_s4 + $0xc0] sm:$0x33]  ;;  %v671_v21 = vld [vmem:[%s933_s4 + $0x10] sm:$0xf]  ;;  %v712_v24 = vor.u32 %v763_v10, %v711_v9 }
  0x3d   : > { %466 = vmatpush.bf16.msra.mxu2 %v704_v55  ;;  %479 = vmatpush.bf16.msra.mxu3 %v708_v56  ;;  %v375_v12 = vpack.c.b16 %v345_v3, %v345_v3  ;;  %v376_v13 = vpack.c.b16 %v346_v6, %v346_v6  ;;  %v417_v14 = vsel %vm403_vm0, %v373_v1, 0  ;;  %v420_v15 = vsel %vm403_vm0, %v374_v2, 0  ;;  %v969_v18 = vld [vmem:[%s1037_s0] sm:$0xf]  ;;  %v719_v22 = vld [vmem:[%s933_s4 + $0x68] sm:$0xf] }
  0x3e   : > { %440 = vmatpush.bf16.msra.mxu0 %v696_v50  ;;  %453 = vmatpush.bf16.msra.mxu1 %v700_v51  ;;  %v347_v19 = vunpack.c.l.b16 %v267_v17  ;;  %v348_v20 = vunpack.c.h.b16 %v267_v17  ;;  %v764_v23 = vld [vmem:[%s933_s4 + $0x8c] sm:$0xf0]  ;;  %v716_v25 = vor.u32 %v758_v11, %v713_v16  ;;  %v759_v28 = vld [vmem:[%s933_s4 + $0x6c] sm:$0xf]  ;;  %v721_v29 = vld [vmem:[%s933_s4 + $0x90] sm:$0xf0] }
  0x3f   : > { %v423_v26 = vsel %vm403_vm0, %v375_v12, 0  ;;  %v426_v27 = vsel %vm403_vm0, %v376_v13, 0  ;;  %v753_v30 = vld [vmem:[%s933_s4 + $0x34] sm:$0xf0]  ;;  %v748_v31 = vld [vmem:[%s933_s4 + $0x14] sm:$0xf]  ;;  %v720_v35 = vor.u32 %v764_v23, %v719_v22  ;;  %v724_v36 = vor.u32 %v759_v28, %v721_v29 }
  0x40   : > { %v673_v32 = vld [vmem:[%s933_s4 + $0x38] sm:$0xf0]  ;;  %v377_v33 = vpack.c.b16 %v347_v19, %v347_v19  ;;  %v378_v34 = vpack.c.b16 %v348_v20, %v348_v20  ;;  %v679_v37 = vld [vmem:[%s933_s4 + $0x18] sm:$0xf]  ;;  %v672_v38 = vor.u32 %v753_v30, %v671_v21  ;;  %v754_v40 = vld [vmem:[%s933_s4 + $0x3c] sm:$0xf0] }
  0x41   : > { %467 = vmatpush.bf16.msra.mxu2 %v664_v7  ;;  %480 = vmatpush.bf16.msra.mxu3 %v668_v8  ;;  %v676_v39 = vor.u32 %v748_v31, %v673_v32  ;;  %v749_v41 = vld [vmem:[%s933_s4 + $0x1c] sm:$0xf]  ;;  %v681_v42 = vld [vmem:[%s933_s4 + $0x40] sm:$0xf0]  ;;  %v727_v43 = vld [vmem:[%s933_s4 + $0x70] sm:$0xf]  ;;  %v680_v49 = vor.u32 %v754_v40, %v679_v37 }
  0x42   : > { %441 = vmatpush.bf16.msra.mxu0 %v656_v4  ;;  %454 = vmatpush.bf16.msra.mxu1 %v660_v5  ;;  %v765_v44 = vld [vmem:[%s933_s4 + $0x94] sm:$0xf0]  ;;  %v429_v45 = vsel %vm403_vm0, %v377_v33, 0  ;;  %v432_v46 = vsel %vm403_vm0, %v378_v34, 0  ;;  %v760_v47 = vld [vmem:[%s933_s4 + $0x74] sm:$0xf]  ;;  %v684_v50 = vor.u32 %v749_v41, %v681_v42 }
  0x43   : > { %v729_v48 = vld [vmem:[%s933_s4 + $0x98] sm:$0xf0]  ;;  %v728_v51 = vor.u32 %v765_v44, %v727_v43  ;;  %v687_v53 = vld [vmem:[%s933_s4 + $0x20] sm:$0xf]  ;;  %v755_v54 = vld [vmem:[%s933_s4 + $0x44] sm:$0xf0] }
  0x44   : > { %735 = vmatmul.msk.bf16.vlgmr.msra.gmra.mxu2 %vm399_vm1, %v969_v18  ;;  %736 = vmatmul.msk.bf16.vlgmr.msra.gmra.mxu3 %vm399_vm1, %v969_v18  ;;  %v732_v52 = vor.u32 %v760_v47, %v729_v48  ;;  %v750_v55 = vld [vmem:[%s933_s4 + $0x24] sm:$0xf]  ;;  %v689_v56 = vld [vmem:[%s933_s4 + $0x48] sm:$0xf0]  ;;  %v688_v57 = vor.u32 %v755_v54, %v687_v53  ;;  %s1045_s7 = smov (!%p236_p8, %s235_s7), 19 }
  0x45   : > { %733 = vmatmul.msk.bf16.vlgmr.msra.gmra.mxu0 %vm399_vm1, %v969_v18  ;;  %734 = vmatmul.msk.bf16.vlgmr.msra.gmra.mxu1 %vm399_vm1, %v969_v18  ;;  %v692_v58 = vor.u32 %v750_v55, %v689_v56  ;;  %s652_s8 = sshll.u32 %s1045_s7, 2 }
  0x46   : > { %491 = vmatpush.bf16.msrb.mxu0 %v417_v14  ;;  %504 = vmatpush.bf16.msrb.mxu1 %v420_v15  ;;  %s1020_s11 = scalar_lea.vmem %s1040_s3, %s652_s8 }
  0x47   : > { %517 = vmatpush.bf16.msrb.mxu2 %v423_v26  ;;  %530 = vmatpush.bf16.msrb.mxu3 %v426_v27 }
  0x4a   : > { %492 = vmatpush.bf16.msrb.mxu0 %v712_v24  ;;  %505 = vmatpush.bf16.msrb.mxu1 %v716_v25 }
  0x4b   : > { %518 = vmatpush.bf16.msrb.mxu2 %v720_v35  ;;  %531 = vmatpush.bf16.msrb.mxu3 %v724_v36 }
  0x4e   : > { %493 = vmatpush.bf16.msrb.mxu0 %v672_v38  ;;  %506 = vmatpush.bf16.msrb.mxu1 %v676_v39 }
  0x4f   : > { %519 = vmatpush.bf16.msrb.mxu2 %v680_v49  ;;  %532 = vmatpush.bf16.msrb.mxu3 %v684_v50 }
  0x52   : > { %543 = vmatpush.bf16.msra.mxu0 %v429_v45  ;;  %556 = vmatpush.bf16.msra.mxu1 %v432_v46 }
  0x54   : > { %739 = vmatmul.msk.bf16.vlgmr.msrb.gmra.mxu2 %vm399_vm1, %v969_v18  ;;  %740 = vmatmul.msk.bf16.vlgmr.msrb.gmra.mxu3 %vm399_vm1, %v969_v18 }
  0x55   : > { %737 = vmatmul.msk.bf16.vlgmr.msrb.gmra.mxu0 %vm399_vm1, %v969_v18  ;;  %738 = vmatmul.msk.bf16.vlgmr.msrb.gmra.mxu1 %vm399_vm1, %v969_v18 }
  0x56   : > { %544 = vmatpush.bf16.msra.mxu0 %v728_v51  ;;  %557 = vmatpush.bf16.msra.mxu1 %v732_v52 }
  0x5a   : > { %545 = vmatpush.bf16.msra.mxu0 %v688_v57  ;;  %558 = vmatpush.bf16.msra.mxu1 %v692_v58 }
  0x65   : > { %741 = vmatmul.msk.bf16.vlgmr.msra.gmra.mxu0 %vm399_vm1, %v969_v18  ;;  %742 = vmatmul.msk.bf16.vlgmr.msra.gmra.mxu1 %vm399_vm1, %v969_v18 }
  0xa7   : > { %v272_v59 = vpop.permute.xlu0 %271 }
  0xc2   : > { %v443_v60 = vpop.f32.mrf.mxu0  ;;  %v456_v61 = vpop.f32.mrf.mxu1 }
  0xc3   : > { %v444_v62 = vadd.f32 %v443_v60, %v272_v59  ;;  %v457_v63 = vadd.f32 %v456_v61, %v272_v59 }
  0xc5   : > { %v564_v0 = vmax.f32 %v444_v62, 0.0  ;;  %v565_v1 = vmax.f32 %v457_v63, 0.0 }
  0xc7   : > { %v574_v2 = vpack.c.bf16 %v565_v1, %v564_v0  ;;  %v469_v3 = vpop.f32.mrf.mxu2  ;;  %v482_v4 = vpop.f32.mrf.mxu3 }
  0xc8   : > { %v470_v7 = vadd.f32 %v469_v3, %v272_v59  ;;  %v483_v8 = vadd.f32 %v482_v4, %v272_v59 }
  0xc9   : > { %579 = vst [vmem:[%s1020_s11] sm:$0xff] %v574_v2 }
  0xca   : > { %v445_v5 = vpop.f32.mrf.mxu0  ;;  %v458_v6 = vpop.f32.mrf.mxu1  ;;  %v566_v9 = vmax.f32 %v470_v7, 0.0  ;;  %v567_v10 = vmax.f32 %v483_v8, 0.0 }
  0xcc   : > { %v575_v11 = vpack.c.bf16 %v567_v10, %v566_v9 }
  0xce   : > { %580 = vst [vmem:[%s1020_s11 + $0x8] sm:$0xff] %v575_v11 }
  0xcf   : > { %v471_v12 = vpop.f32.mrf.mxu2  ;;  %v484_v13 = vpop.f32.mrf.mxu3 }
  0xd2   : > { %v495_v14 = vpop.f32.mrf.mxu0  ;;  %v508_v15 = vpop.f32.mrf.mxu1 }
  0xd3   : > { %v496_v16 = vadd.f32 %v495_v14, %v272_v59  ;;  %v509_v17 = vadd.f32 %v508_v15, %v272_v59 }
  0xd5   : > { %v568_v18 = vmax.f32 %v496_v16, 0.0  ;;  %v569_v19 = vmax.f32 %v509_v17, 0.0 }
  0xd7   : > { %v576_v20 = vpack.c.bf16 %v569_v19, %v568_v18  ;;  %v521_v21 = vpop.f32.mrf.mxu2  ;;  %v534_v22 = vpop.f32.mrf.mxu3 }
  0xd8   : > { %v522_v25 = vadd.f32 %v521_v21, %v272_v59  ;;  %v535_v26 = vadd.f32 %v534_v22, %v272_v59 }
  0xd9   : > { %581 = vst [vmem:[%s1020_s11 + $0x10] sm:$0xff] %v576_v20 }
  0xda   : > { %v497_v23 = vpop.f32.mrf.mxu0  ;;  %v510_v24 = vpop.f32.mrf.mxu1  ;;  %v570_v27 = vmax.f32 %v522_v25, 0.0  ;;  %v571_v28 = vmax.f32 %v535_v26, 0.0 }
  0xdc   : > { %v577_v29 = vpack.c.bf16 %v571_v28, %v570_v27 }
  0xde   : > { %582 = vst [vmem:[%s1020_s11 + $0x18] sm:$0xff] %v577_v29 }
  0xdf   : > { %v523_v30 = vpop.f32.mrf.mxu2  ;;  %v536_v31 = vpop.f32.mrf.mxu3 }
  0xe2   : > { %v547_v32 = vpop.f32.mrf.mxu0  ;;  %v560_v33 = vpop.f32.mrf.mxu1 }
  0xe3   : > { %v548_v34 = vadd.f32 %v547_v32, %v272_v59  ;;  %v561_v35 = vadd.f32 %v560_v33, %v272_v59 }
  0xe5   : > { %v572_v36 = vmax.f32 %v548_v34, 0.0  ;;  %v573_v37 = vmax.f32 %v561_v35, 0.0 }
  0xe7   : > { %v578_v38 = vpack.c.bf16 %v573_v37, %v572_v36 }
  0xe9   : > { %583 = vst [vmem:[%s1020_s11 + $0x20] sm:$0xff] %v578_v38 }
  0xea   : > { %v549_v39 = vpop.f32.mrf.mxu0  ;;  %v562_v40 = vpop.f32.mrf.mxu1 }
  0xeb PF: > { %p10_p9 = scmp.ge.s32.totalorder %s856_s16, 4   ;;  %s1041_s12 = smov %s812_s13 }
  0xec   : > { %s1042_s13 = smov %s865_s19  ;;  %s1043_s14 = smov %s856_s16 }
  0xed   :  { %12 = sbr.rel (!%p10_p9) target bundleno = 2 (0x2), region = 90 }

// kernel: qnetwork_forward.8
= control target key start
LH: loop header
LB: loop body
LE: loop exit
PB: predicated region body
PF: predicated region fallthrough
CT: control target
= control target key end

     0   :  { %v260_v3 = vmov 0   ;;  %vm98_vm0 = vcmask 261120   ;;  %s373_s1 = inlined_call_operand.vmem [shape: bf16[32,640], index: 1, kind: input, shape index: {}]   ;;  %s374_s0 = inlined_call_operand.vmem [shape: bf16[16,32], index: 0, kind: input, shape index: {}]   ;;  %s375_s2 = inlined_call_operand.vmem [shape: f32[16,1], index: 2, kind: input, shape index: {}]   ;;  %s376_s3 = inlined_call_operand.vmem [shape: bf16[16,640], index: 3, kind: output, shape index: {}]  }
   0x1   :  { %v224_v0 = vld [vmem:[%s373_s1 + $0x28] sm:$0xf]  ;;  %v255_v1 = vld [vmem:[%s373_s1 + $0x38] sm:$0xf0]  ;;  %v253_v2 = vld [vmem:[%s373_s1 + $0x2c] sm:$0xf]  ;;  %259 = vset.pattern.permute.xlu0 %v260_v3 }
   0x2   :  { %v225_v4 = vor.u32 %v255_v1, %v224_v0  ;;  %v226_v5 = vld [vmem:[%s373_s1 + $0x3c] sm:$0xf0]  ;;  %v232_v6 = vld [vmem:[%s373_s1 + $0x30] sm:$0xf]  ;;  %v256_v7 = vld [vmem:[%s373_s1 + $0x40] sm:$0xf0] }
   0x3   :  { %v229_v8 = vor.u32 %v253_v2, %v226_v5  ;;  %v233_v9 = vor.u32 %v256_v7, %v232_v6  ;;  %v254_v10 = vld [vmem:[%s373_s1 + $0x34] sm:$0xf]  ;;  %v234_v11 = vld [vmem:[%s373_s1 + $0x44] sm:$0xf0]  ;;  %v204_v12 = vld [vmem:[%s373_s1] sm:$0xf] }
   0x4   :  { %108 = vmatpush.bf16.msra.mxu0 %v225_v4  ;;  %v237_v13 = vor.u32 %v254_v10, %v234_v11  ;;  %v250_v14 = vld [vmem:[%s373_s1 + $0x10] sm:$0xf0]  ;;  %v248_v15 = vld [vmem:[%s373_s1 + $0x4] sm:$0xf]  ;;  %v206_v16 = vld [vmem:[%s373_s1 + $0x14] sm:$0xf0] }
   0x5   :  { %122 = vmatpush.bf16.msra.mxu1 %v229_v8  ;;  %136 = vmatpush.bf16.msra.mxu2 %v233_v9  ;;  %v205_v17 = vor.u32 %v250_v14, %v204_v12  ;;  %v209_v18 = vor.u32 %v248_v15, %v206_v16  ;;  %v212_v19 = vld [vmem:[%s373_s1 + $0x8] sm:$0xf]  ;;  %v251_v20 = vld [vmem:[%s373_s1 + $0x18] sm:$0xf0]  ;;  %v249_v21 = vld [vmem:[%s373_s1 + $0xc] sm:$0xf] }
   0x6   :  { %150 = vmatpush.bf16.msra.mxu3 %v237_v13  ;;  %v213_v22 = vor.u32 %v251_v20, %v212_v19  ;;  %v214_v23 = vld [vmem:[%s373_s1 + $0x1c] sm:$0xf0]  ;;  %v240_v25 = vld [vmem:[%s373_s1 + $0x38] sm:$0xf]  ;;  %v257_v27 = vld [vmem:[%s373_s1 + $0x48] sm:$0xf0] }
   0x7   :  { %v247_v24 = vld [vmem:[%s374_s0] sm:$0xff]  ;;  %v217_v26 = vor.u32 %v249_v21, %v214_v23  ;;  %v220_v28 = vld [vmem:[%s373_s1 + $0x10] sm:$0xf]  ;;  %v241_v30 = vor.u32 %v257_v27, %v240_v25  ;;  %v30_v33 = vld [vmem:[%s375_s2 + $0x8] sm:$0xff] }
   0x8   :  { %v252_v29 = vld [vmem:[%s373_s1 + $0x20] sm:$0xf0]  ;;  %109 = vmatpush.bf16.msra.mxu0 %v205_v17 }
   0x9   :  { %v29_v31 = vld [vmem:[%s375_s2] sm:$0xff]  ;;  %123 = vmatpush.bf16.msra.mxu1 %v209_v18  ;;  %137 = vmatpush.bf16.msra.mxu2 %v213_v22  ;;  %v221_v32 = vor.u32 %v252_v29, %v220_v28 }
   0xa   :  { %151 = vmatpush.bf16.msra.mxu3 %v217_v26  ;;  %33 = vperm.xlu0 %259, %v29_v31  }
   0xb   :  { %242 = vmatmul.msk.bf16.vlgmr.msra.gmra.mxu0 %vm98_vm0, %v247_v24 }
   0xc   :  { %164 = vmatpush.bf16.msrb.mxu0 %v241_v30  ;;  %243 = vmatmul.msk.bf16.vlgmr.msra.gmra.mxu1 %vm98_vm0, %v247_v24 }
   0xd   :  { %244 = vmatmul.msk.bf16.vlgmr.msra.gmra.mxu2 %vm98_vm0, %v247_v24  ;;  %245 = vmatmul.msk.bf16.vlgmr.msra.gmra.mxu3 %vm98_vm0, %v247_v24 }
  0x10   :  { %165 = vmatpush.bf16.msrb.mxu0 %v221_v32 }
  0x12   :  { %38 = vperm.xlu0 %259, %v30_v33  }
  0x1b   :  { %246 = vmatmul.msk.bf16.vlgmr.msrb.gmra.mxu0 %vm98_vm0, %v247_v24 }
  0x7c   :  { %v34_v34 = vpop.permute.xlu0 %33 }
  0x84   :  { %v39_v42 = vpop.permute.xlu0 %38 }
  0x88   :  { %v111_v35 = vpop.f32.mrf.mxu0 }
  0x89   :  { %v112_v36 = vadd.f32 %v111_v35, %v34_v34  ;;  %v125_v37 = vpop.f32.mrf.mxu1 }
  0x8a   :  { %v126_v38 = vadd.f32 %v125_v37, %v34_v34 }
  0x8b   :  { %v172_v39 = vmax.f32 %v112_v36, 0.0 }
  0x8c   :  { %v173_v40 = vmax.f32 %v126_v38, 0.0 }
  0x8e   :  { %v182_v41 = vpack.c.bf16 %v173_v40, %v172_v39 }
  0x90   :  { %v139_v43 = vpop.f32.mrf.mxu2  ;;  %188 = vst [vmem:[%s376_s3] sm:$0xff] %v182_v41  ;;  %v113_v44 = vpop.f32.mrf.mxu0 }
  0x91   :  { %v140_v45 = vadd.f32 %v139_v43, %v34_v34  ;;  %v153_v46 = vpop.f32.mrf.mxu3  ;;  %v114_v47 = vadd.f32 %v113_v44, %v39_v42  ;;  %v127_v48 = vpop.f32.mrf.mxu1 }
  0x92   :  { %v154_v49 = vadd.f32 %v153_v46, %v34_v34  ;;  %v128_v50 = vadd.f32 %v127_v48, %v39_v42 }
  0x93   :  { %v174_v51 = vmax.f32 %v140_v45, 0.0  ;;  %v177_v52 = vmax.f32 %v114_v47, 0.0 }
  0x94   :  { %v175_v53 = vmax.f32 %v154_v49, 0.0  ;;  %v178_v54 = vmax.f32 %v128_v50, 0.0 }
  0x96   :  { %v183_v55 = vpack.c.bf16 %v175_v53, %v174_v51  ;;  %v185_v56 = vpack.c.bf16 %v178_v54, %v177_v52 }
  0x98   :  { %189 = vst [vmem:[%s376_s3 + $0x8] sm:$0xff] %v183_v55  ;;  %v141_v57 = vpop.f32.mrf.mxu2  ;;  %v167_v60 = vpop.f32.mrf.mxu0 }
  0x99   :  { %191 = vst [vmem:[%s376_s3 + $0x14] sm:$0xff] %v185_v56  ;;  %v142_v58 = vadd.f32 %v141_v57, %v39_v42  ;;  %v155_v59 = vpop.f32.mrf.mxu3  ;;  %v168_v62 = vadd.f32 %v167_v60, %v34_v34 }
  0x9a   :  { %v156_v61 = vadd.f32 %v155_v59, %v39_v42 }
  0x9b   :  { %v179_v63 = vmax.f32 %v142_v58, 0.0  ;;  %v176_v1 = vmax.f32 %v168_v62, 0.0 }
  0x9c   :  { %v180_v0 = vmax.f32 %v156_v61, 0.0 }
  0x9d   :  { %v184_v3 = vpack.c.bf16 %v176_v1, %v176_v1 }
  0x9e   :  { %v186_v2 = vpack.c.bf16 %v180_v0, %v179_v63 }
  0x9f   :  { %190 = vst [vmem:[%s376_s3 + $0x10] sm:$0xf] %v184_v3 }
  0xa0   :  { %192 = vst [vmem:[%s376_s3 + $0x1c] sm:$0xff] %v186_v2  ;;  %v169_v4 = vpop.f32.mrf.mxu0 }
  0xa1   :  { %v170_v5 = vadd.f32 %v169_v4, %v39_v42 }
  0xa3   :  { %v181_v6 = vmax.f32 %v170_v5, 0.0 }
  0xa5   :  { %v187_v7 = vpack.c.bf16 %v181_v6, %v181_v6 }
  0xa7   :  { %193 = vst [vmem:[%s376_s3 + $0x24] sm:$0xf] %v187_v7 }

// kernel: qnetwork_forward.9
= control target key start
LH: loop header
LB: loop body
LE: loop exit
PB: predicated region body
PF: predicated region fallthrough
CT: control target
= control target key end

     0   :  { %vm326_vm0 = vcmask 130048   ;;  %s1077_s1 = inlined_call_operand.vmem [shape: bf16[144,640], index: 1, kind: input, shape index: {}]   ;;  %s1078_s0 = inlined_call_operand.vmem [shape: bf16[16,144], index: 0, kind: input, shape index: {}]   ;;  %s1079_s2 = inlined_call_operand.vmem [shape: f32[16,1], index: 2, kind: input, shape index: {}]   ;;  %s1080_s3 = inlined_call_operand.vmem [shape: bf16[16,640], index: 3, kind: output, shape index: {}]  }
   0x1   :  { %v646_v0 = vld [vmem:[%s1077_s1 + $0x118] sm:$0xf]  ;;  %v728_v1 = vld [vmem:[%s1077_s1 + $0x128] sm:$0xf0]  ;;  %v726_v2 = vld [vmem:[%s1077_s1 + $0x11c] sm:$0xf] }
   0x2   :  { %v647_v3 = vor.u32 %v728_v1, %v646_v0  ;;  %v648_v4 = vld [vmem:[%s1077_s1 + $0x12c] sm:$0xf0]  ;;  %v723_v6 = vld [vmem:[%s1077_s1 + $0x100] sm:$0xf0]  ;;  %v721_v8 = vld [vmem:[%s1077_s1 + $0xf4] sm:$0xf] }
   0x3   :  { %v626_v5 = vld [vmem:[%s1077_s1 + $0xf0] sm:$0xf]  ;;  %v651_v7 = vor.u32 %v726_v2, %v648_v4  ;;  %v628_v9 = vld [vmem:[%s1077_s1 + $0x104] sm:$0xf0]  ;;  %v731_v10 = vld [vmem:[%s1077_s1 + $0x144] sm:$0xf] }
   0x4   :  { %330 = vmatpush.bf16.msra.mxu0 %v647_v3  ;;  %v627_v11 = vor.u32 %v723_v6, %v626_v5  ;;  %v668_v12 = vld [vmem:[%s1077_s1 + $0x154] sm:$0xf0]  ;;  %v689_v13 = vld [vmem:[%s1078_s0 + $0x4] sm:$0xf]  ;;  %v500_v14 = vld [vmem:[%s1078_s0 + $0x8] sm:$0xf0]  ;;  %v631_v15 = vor.u32 %v721_v8, %v628_v9 }
   0x5   :  { %358 = vmatpush.bf16.msra.mxu2 %v651_v7  ;;  %v671_v16 = vor.u32 %v731_v10, %v668_v12  ;;  %v674_v17 = vld [vmem:[%s1077_s1 + $0x148] sm:$0xf]  ;;  %v734_v18 = vld [vmem:[%s1077_s1 + $0x158] sm:$0xf0]  ;;  %v804_v20 = vor.u32 %v689_v13, %v500_v14  ;;  %v666_v23 = vld [vmem:[%s1077_s1 + $0x140] sm:$0xf] }
   0x6   :  { %v606_v19 = vld [vmem:[%s1077_s1 + $0xc8] sm:$0xf]  ;;  %v675_v21 = vor.u32 %v734_v18, %v674_v17  ;;  %v718_v22 = vld [vmem:[%s1077_s1 + $0xd8] sm:$0xf0]  ;;  %v733_v24 = vld [vmem:[%s1077_s1 + $0x150] sm:$0xf0] }
   0x7   :  { %379 = vmatpush.bf16.msra.mxu3 %v671_v16  ;;  %v667_v25 = vor.u32 %v733_v24, %v666_v23  ;;  %v716_v26 = vld [vmem:[%s1077_s1 + $0xcc] sm:$0xf]  ;;  %v608_v27 = vld [vmem:[%s1077_s1 + $0xdc] sm:$0xf0]  ;;  %v727_v28 = vld [vmem:[%s1077_s1 + $0x124] sm:$0xf]  ;;  %v607_v29 = vor.u32 %v718_v22, %v606_v19 }
   0x8   :  { %331 = vmatpush.bf16.msra.mxu0 %v627_v11  ;;  %v656_v30 = vld [vmem:[%s1077_s1 + $0x134] sm:$0xf0]  ;;  %v654_v31 = vld [vmem:[%s1077_s1 + $0x120] sm:$0xf]  ;;  %v729_v32 = vld [vmem:[%s1077_s1 + $0x130] sm:$0xf0]  ;;  %v611_v33 = vor.u32 %v716_v26, %v608_v27 }
   0x9   :  { %359 = vmatpush.bf16.msra.mxu2 %v631_v15  ;;  %351 = vmatpush.bf16.msra.mxu1 %v667_v25  ;;  %v659_v34 = vor.u32 %v727_v28, %v656_v30  ;;  %v655_v35 = vor.u32 %v729_v32, %v654_v31  ;;  %v586_v36 = vld [vmem:[%s1077_s1 + $0xa0] sm:$0xf]  ;;  %v713_v37 = vld [vmem:[%s1077_s1 + $0xb0] sm:$0xf0]  ;;  %v711_v38 = vld [vmem:[%s1077_s1 + $0xa4] sm:$0xf] }
   0xa   :  { %685 = vmatmul.msk.bf16.vlgmr.msra.gmra.mxu3 %vm326_vm0, %v804_v20  ;;  %v588_v39 = vld [vmem:[%s1077_s1 + $0xb4] sm:$0xf0]  ;;  %v722_v40 = vld [vmem:[%s1077_s1 + $0xfc] sm:$0xf]  ;;  %v636_v41 = vld [vmem:[%s1077_s1 + $0x10c] sm:$0xf0]  ;;  %v587_v45 = vor.u32 %v713_v37, %v586_v36 }
   0xb   :  { %407 = vmatpush.bf16.msrb.mxu3 %v675_v21  ;;  %v639_v42 = vor.u32 %v722_v40, %v636_v41  ;;  %v634_v43 = vld [vmem:[%s1077_s1 + $0xf8] sm:$0xf]  ;;  %v724_v44 = vld [vmem:[%s1077_s1 + $0x108] sm:$0xf0]  ;;  %v591_v49 = vor.u32 %v711_v38, %v588_v39  ;;  %v717_v50 = vld [vmem:[%s1077_s1 + $0xd4] sm:$0xf] }
   0xc   :  { %332 = vmatpush.bf16.msra.mxu0 %v607_v29  ;;  %v635_v46 = vor.u32 %v724_v44, %v634_v43  ;;  %v566_v47 = vld [vmem:[%s1077_s1 + $0x78] sm:$0xf]  ;;  %v708_v48 = vld [vmem:[%s1077_s1 + $0x88] sm:$0xf0]  ;;  %684 = vmatmul.msk.bf16.vlgmr.msra.gmra.mxu1 %vm326_vm0, %v804_v20  ;;  %v616_v51 = vld [vmem:[%s1077_s1 + $0xe4] sm:$0xf0] }
   0xd   :  { %386 = vmatpush.bf16.msrb.mxu1 %v655_v35  ;;  %360 = vmatpush.bf16.msra.mxu2 %v611_v33  ;;  %v614_v52 = vld [vmem:[%s1077_s1 + $0xd0] sm:$0xf]  ;;  %v706_v53 = vld [vmem:[%s1077_s1 + $0x7c] sm:$0xf]  ;;  %v719_v55 = vld [vmem:[%s1077_s1 + $0xe0] sm:$0xf0]  ;;  %v619_v56 = vor.u32 %v717_v50, %v616_v51  ;;  %v567_v59 = vor.u32 %v708_v48, %v566_v47 }
   0xe   :  { %v568_v54 = vld [vmem:[%s1077_s1 + $0x8c] sm:$0xf0]  ;;  %v615_v57 = vor.u32 %v719_v55, %v614_v52  ;;  %v712_v58 = vld [vmem:[%s1077_s1 + $0xac] sm:$0xf]  ;;  %v596_v60 = vld [vmem:[%s1077_s1 + $0xbc] sm:$0xf0] }
   0xf   :  { %414 = vmatpush.bf16.msra.mxu3 %v659_v34  ;;  %v594_v61 = vld [vmem:[%s1077_s1 + $0xa8] sm:$0xf]  ;;  %v714_v62 = vld [vmem:[%s1077_s1 + $0xb8] sm:$0xf0]  ;;  %v571_v63 = vor.u32 %v706_v53, %v568_v54  ;;  %v546_v0 = vld [vmem:[%s1077_s1 + $0x50] sm:$0xf]  ;;  %v599_v4 = vor.u32 %v712_v58, %v596_v60 }
  0x10   :  { %333 = vmatpush.bf16.msra.mxu0 %v587_v45  ;;  %v703_v1 = vld [vmem:[%s1077_s1 + $0x60] sm:$0xf0]  ;;  %v701_v2 = vld [vmem:[%s1077_s1 + $0x54] sm:$0xf]  ;;  %v548_v3 = vld [vmem:[%s1077_s1 + $0x64] sm:$0xf0]  ;;  %v595_v5 = vor.u32 %v714_v62, %v594_v61 }
  0x11   :  { %387 = vmatpush.bf16.msrb.mxu1 %v635_v46  ;;  %361 = vmatpush.bf16.msra.mxu2 %v591_v49  ;;  %v707_v6 = vld [vmem:[%s1077_s1 + $0x84] sm:$0xf]  ;;  %v547_v7 = vor.u32 %v703_v1, %v546_v0  ;;  %v576_v8 = vld [vmem:[%s1077_s1 + $0x94] sm:$0xf0]  ;;  %v574_v9 = vld [vmem:[%s1077_s1 + $0x80] sm:$0xf]  ;;  %v551_v11 = vor.u32 %v701_v2, %v548_v3 }
  0x12   :  { %v709_v10 = vld [vmem:[%s1077_s1 + $0x90] sm:$0xf0]  ;;  %v526_v12 = vld [vmem:[%s1077_s1 + $0x28] sm:$0xf]  ;;  %v698_v13 = vld [vmem:[%s1077_s1 + $0x38] sm:$0xf0]  ;;  %v579_v16 = vor.u32 %v707_v6, %v576_v8 }
  0x13   :  { %415 = vmatpush.bf16.msra.mxu3 %v639_v42  ;;  %v696_v14 = vld [vmem:[%s1077_s1 + $0x2c] sm:$0xf]  ;;  %v528_v15 = vld [vmem:[%s1077_s1 + $0x3c] sm:$0xf0]  ;;  %v575_v17 = vor.u32 %v709_v10, %v574_v9  ;;  %v702_v18 = vld [vmem:[%s1077_s1 + $0x5c] sm:$0xf]  ;;  %v527_v19 = vor.u32 %v698_v13, %v526_v12 }
  0x14   :  { %334 = vmatpush.bf16.msra.mxu0 %v567_v59  ;;  %v556_v21 = vld [vmem:[%s1077_s1 + $0x6c] sm:$0xf0]  ;;  %v554_v22 = vld [vmem:[%s1077_s1 + $0x58] sm:$0xf]  ;;  %v704_v23 = vld [vmem:[%s1077_s1 + $0x68] sm:$0xf0]  ;;  %v531_v24 = vor.u32 %v696_v14, %v528_v15 }
  0x15   :  { %388 = vmatpush.bf16.msrb.mxu1 %v615_v57  ;;  %362 = vmatpush.bf16.msra.mxu2 %v571_v63  ;;  %v506_v25 = vld [vmem:[%s1077_s1] sm:$0xf]  ;;  %v693_v26 = vld [vmem:[%s1077_s1 + $0x10] sm:$0xf0]  ;;  %v691_v27 = vld [vmem:[%s1077_s1 + $0x4] sm:$0xf]  ;;  %v559_v31 = vor.u32 %v702_v18, %v556_v21  ;;  %v555_v32 = vor.u32 %v704_v23, %v554_v22 }
  0x16   :  { %v508_v28 = vld [vmem:[%s1077_s1 + $0x14] sm:$0xf0]  ;;  %v662_v29 = vld [vmem:[%s1077_s1 + $0x128] sm:$0xf]  ;;  %v730_v30 = vld [vmem:[%s1077_s1 + $0x138] sm:$0xf0]  ;;  %v507_v36 = vor.u32 %v693_v26, %v506_v25 }
  0x17   :  { %416 = vmatpush.bf16.msra.mxu3 %v619_v56  ;;  %v498_v33 = vld [vmem:[%s1078_s0] sm:$0xf]  ;;  %v690_v34 = vld [vmem:[%s1078_s0 + $0x4] sm:$0xf0]  ;;  %v697_v37 = vld [vmem:[%s1077_s1 + $0x34] sm:$0xf]  ;;  %v511_v41 = vor.u32 %v691_v27, %v508_v28  ;;  %v663_v45 = vor.u32 %v730_v30, %v662_v29 }
  0x18   :  { %335 = vmatpush.bf16.msra.mxu0 %v547_v7  ;;  %v71_v35 = vld [vmem:[%s1079_s2] sm:$0xff]  ;;  %v536_v38 = vld [vmem:[%s1077_s1 + $0x44] sm:$0xf0]  ;;  %v738_v39 = vmov 0   ;;  %v732_v40 = vld [vmem:[%s1077_s1 + $0x14c] sm:$0xf]  ;;  %v499_v47 = vor.u32 %v690_v34, %v498_v33 }
  0x19   :  { %389 = vmatpush.bf16.msrb.mxu1 %v595_v5  ;;  %363 = vmatpush.bf16.msra.mxu2 %v551_v11  ;;  %v534_v42 = vld [vmem:[%s1077_s1 + $0x30] sm:$0xf]  ;;  %v699_v43 = vld [vmem:[%s1077_s1 + $0x40] sm:$0xf0]  ;;  %v676_v44 = vld [vmem:[%s1077_s1 + $0x15c] sm:$0xf0]  ;;  %v539_v48 = vor.u32 %v697_v37, %v536_v38 }
  0x1a   :  { %686 = vmatmul.msk.bf16.vlgmr.msrb.gmra.mxu3 %vm326_vm0, %v804_v20  ;;  %737 = vset.pattern.permute.xlu0 %v738_v39  ;;  %v679_v46 = vor.u32 %v732_v40, %v676_v44  ;;  %v642_v49 = vld [vmem:[%s1077_s1 + $0x100] sm:$0xf]  ;;  %v725_v50 = vld [vmem:[%s1077_s1 + $0x110] sm:$0xf0]  ;;  %v535_v51 = vor.u32 %v699_v43, %v534_v42  ;;  %v692_v52 = vld [vmem:[%s1077_s1 + $0xc] sm:$0xf] }
  0x1b   :  { %417 = vmatpush.bf16.msra.mxu3 %v599_v4  ;;  %75 = vperm.xlu0 %737, %v71_v35   ;;  %v516_v53 = vld [vmem:[%s1077_s1 + $0x1c] sm:$0xf0]  ;;  %v514_v54 = vld [vmem:[%s1077_s1 + $0x8] sm:$0xf]  ;;  %v694_v55 = vld [vmem:[%s1077_s1 + $0x18] sm:$0xf0]  ;;  %v643_v56 = vor.u32 %v725_v50, %v642_v49 }
  0x1c   :  { %336 = vmatpush.bf16.msra.mxu0 %v527_v19  ;;  %v72_v57 = vld [vmem:[%s1079_s2 + $0x8] sm:$0xff]  ;;  %v682_v58 = vld [vmem:[%s1077_s1 + $0x150] sm:$0xf]  ;;  %v735_v59 = vld [vmem:[%s1077_s1 + $0x160] sm:$0xf0]  ;;  %v519_v60 = vor.u32 %v692_v52, %v516_v53  ;;  %v515_v63 = vor.u32 %v694_v55, %v514_v54 }
  0x1d   :  { %390 = vmatpush.bf16.msrb.mxu1 %v575_v17  ;;  %364 = vmatpush.bf16.msra.mxu2 %v531_v24  ;;  %v622_v61 = vld [vmem:[%s1077_s1 + $0xd8] sm:$0xf]  ;;  %v720_v62 = vld [vmem:[%s1077_s1 + $0xe8] sm:$0xf0]  ;;  %v683_v0 = vor.u32 %v735_v59, %v682_v58  ;;  %v602_v2 = vld [vmem:[%s1077_s1 + $0xb0] sm:$0xf] }
  0x1e   :  { %v623_v1 = vor.u32 %v720_v62, %v622_v61  ;;  %v715_v3 = vld [vmem:[%s1077_s1 + $0xc0] sm:$0xf0]  ;;  %v582_v5 = vld [vmem:[%s1077_s1 + $0x88] sm:$0xf]  ;;  %v710_v6 = vld [vmem:[%s1077_s1 + $0x98] sm:$0xf0] }
  0x1f   :  { %418 = vmatpush.bf16.msra.mxu3 %v579_v16  ;;  %v603_v4 = vor.u32 %v715_v3, %v602_v2  ;;  %v583_v7 = vor.u32 %v710_v6, %v582_v5  ;;  %v562_v8 = vld [vmem:[%s1077_s1 + $0x60] sm:$0xf]  ;;  %v705_v9 = vld [vmem:[%s1077_s1 + $0x70] sm:$0xf0]  ;;  %v542_v11 = vld [vmem:[%s1077_s1 + $0x38] sm:$0xf] }
  0x20   :  { %337 = vmatpush.bf16.msra.mxu0 %v507_v36  ;;  %v563_v10 = vor.u32 %v705_v9, %v562_v8  ;;  %v700_v12 = vld [vmem:[%s1077_s1 + $0x48] sm:$0xf0]  ;;  %v522_v14 = vld [vmem:[%s1077_s1 + $0x10] sm:$0xf]  ;;  %v695_v15 = vld [vmem:[%s1077_s1 + $0x20] sm:$0xf0] }
  0x21   :  { %391 = vmatpush.bf16.msrb.mxu1 %v555_v32  ;;  %365 = vmatpush.bf16.msra.mxu2 %v511_v41  ;;  %v543_v13 = vor.u32 %v700_v12, %v542_v11  ;;  %v523_v16 = vor.u32 %v695_v15, %v522_v14 }
  0x23   :  { %419 = vmatpush.bf16.msra.mxu3 %v559_v31  ;;  %338 = vmatmul.bf16.vlgmr.msra.gmra.mxu0 %v499_v47 }
  0x24   :  { %435 = vmatpush.bf16.msrb.mxu0 %v679_v46  ;;  %366 = vmatmul.bf16.vlgmr.msra.gmra.mxu2 %v499_v47 }
  0x25   :  { %442 = vmatpush.bf16.msrb.mxu2 %v663_v45  ;;  %392 = vmatpush.bf16.msrb.mxu1 %v535_v51 }
  0x26   :  { %80 = vperm.xlu0 %737, %v72_v57  }
  0x27   :  { %420 = vmatpush.bf16.msra.mxu3 %v539_v48 }
  0x29   :  { %443 = vmatpush.bf16.msrb.mxu2 %v643_v56  ;;  %393 = vmatpush.bf16.msrb.mxu1 %v515_v63 }
  0x2b   :  { %421 = vmatpush.bf16.msra.mxu3 %v519_v60 }
  0x2c   :  { %394 = vmatmul.bf16.vlgmr.msrb.gmra.mxu1 %v499_v47 }
  0x2d   :  { %463 = vmatpush.bf16.msra.mxu1 %v683_v0  ;;  %444 = vmatpush.bf16.msrb.mxu2 %v623_v1 }
  0x2e   :  { %422 = vmatmul.bf16.vlgmr.msra.gmra.mxu3 %v499_v47 }
  0x31   :  { %445 = vmatpush.bf16.msrb.mxu2 %v603_v4 }
  0x33   :  { %687 = vmatmul.msk.bf16.vlgmr.msrb.gmra.mxu0 %vm326_vm0, %v804_v20 }
  0x35   :  { %446 = vmatpush.bf16.msrb.mxu2 %v583_v7 }
  0x39   :  { %447 = vmatpush.bf16.msrb.mxu2 %v563_v10 }
  0x3c   :  { %688 = vmatmul.msk.bf16.vlgmr.msra.gmra.mxu1 %vm326_vm0, %v804_v20 }
  0x3d   :  { %448 = vmatpush.bf16.msrb.mxu2 %v543_v13 }
  0x41   :  { %449 = vmatpush.bf16.msrb.mxu2 %v523_v16 }
  0x44   :  { %450 = vmatmul.bf16.vlgmr.msrb.gmra.mxu2 %v499_v47 }
  0x89   :  { %v353_v18 = vpop.f32.mrf.mxu1 }
  0x8d   :  { %v381_v17 = vpop.f32.mrf.mxu3  ;;  %v76_v23 = vpop.permute.xlu0 %75 }
  0x91   :  { %v355_v22 = vpop.f32.mrf.mxu1 }
  0x95   :  { %v383_v19 = vpop.f32.mrf.mxu3 }
  0x98   :  { %v81_v32 = vpop.permute.xlu0 %80 }
  0x9d   :  { %v409_v21 = vpop.f32.mrf.mxu3 }
  0xa0   :  { %v339_v24 = vpop.f32.mrf.mxu0 }
  0xa1   :  { %v340_v25 = vadd.f32 %v339_v24, %v76_v23 }
  0xa3   :  { %v354_v28 = vadd.f32 %v353_v18, %v340_v25 }
  0xa5   :  { %v411_v26 = vpop.f32.mrf.mxu3  ;;  %v470_v20 = vmax.f32 %v354_v28, 0.0 }
  0xa7   :  { %v367_v27 = vpop.f32.mrf.mxu2 }
  0xa8   :  { %v368_v29 = vadd.f32 %v367_v27, %v76_v23  ;;  %v341_v30 = vpop.f32.mrf.mxu0 }
  0xa9   :  { %v395_v31 = vpop.f32.mrf.mxu1  ;;  %v342_v36 = vadd.f32 %v341_v30, %v81_v32 }
  0xaa   :  { %v396_v33 = vadd.f32 %v395_v31, %v76_v23  ;;  %v382_v34 = vadd.f32 %v381_v17, %v368_v29 }
  0xab   :  { %v356_v42 = vadd.f32 %v355_v22, %v342_v36 }
  0xac   :  { %v471_v35 = vmax.f32 %v382_v34, 0.0  ;;  %v410_v37 = vadd.f32 %v409_v21, %v396_v33 }
  0xad   :  { %v475_v51 = vmax.f32 %v356_v42, 0.0 }
  0xae   :  { %v480_v39 = vpack.c.bf16 %v471_v35, %v470_v20  ;;  %v472_v46 = vmax.f32 %v410_v37, 0.0 }
  0xaf   :  { %v369_v41 = vpop.f32.mrf.mxu2 }
  0xb0   :  { %486 = vst [vmem:[%s1080_s3] sm:$0xff] %v480_v39  ;;  %v370_v43 = vadd.f32 %v369_v41, %v81_v32  ;;  %v437_v44 = vpop.f32.mrf.mxu0 }
  0xb1   :  { %v423_v38 = vpop.f32.mrf.mxu3  ;;  %v397_v45 = vpop.f32.mrf.mxu1 }
  0xb2   :  { %v424_v40 = vadd.f32 %v423_v38, %v76_v23  ;;  %v384_v48 = vadd.f32 %v383_v19, %v370_v43  ;;  %v398_v50 = vadd.f32 %v397_v45, %v81_v32 }
  0xb4   :  { %v438_v47 = vadd.f32 %v437_v44, %v424_v40  ;;  %v476_v52 = vmax.f32 %v384_v48, 0.0  ;;  %v412_v57 = vadd.f32 %v411_v26, %v398_v50 }
  0xb6   :  { %v473_v49 = vmax.f32 %v438_v47, 0.0  ;;  %v483_v55 = vpack.c.bf16 %v476_v52, %v475_v51  ;;  %v477_v60 = vmax.f32 %v412_v57, 0.0 }
  0xb8   :  { %v481_v53 = vpack.c.bf16 %v473_v49, %v472_v46  ;;  %489 = vst [vmem:[%s1080_s3 + $0x14] sm:$0xff] %v483_v55  ;;  %v439_v58 = vpop.f32.mrf.mxu0 }
  0xb9   :  { %v425_v54 = vpop.f32.mrf.mxu3  ;;  %v465_v63 = vpop.f32.mrf.mxu1 }
  0xba   :  { %v426_v56 = vadd.f32 %v425_v54, %v81_v32  ;;  %487 = vst [vmem:[%s1080_s3 + $0x8] sm:$0xff] %v481_v53 }
  0xbc   :  { %v440_v59 = vadd.f32 %v439_v58, %v426_v56 }
  0xbe   :  { %v478_v61 = vmax.f32 %v440_v59, 0.0 }
  0xc0   :  { %v484_v62 = vpack.c.bf16 %v478_v61, %v477_v60 }
  0xc1   :  { %v467_v7 = vpop.f32.mrf.mxu1 }
  0xc2   :  { %490 = vst [vmem:[%s1080_s3 + $0x1c] sm:$0xff] %v484_v62 }
  0xc7   :  { %v451_v0 = vpop.f32.mrf.mxu2 }
  0xc8   :  { %v452_v1 = vadd.f32 %v451_v0, %v76_v23 }
  0xca   :  { %v466_v2 = vadd.f32 %v465_v63, %v452_v1 }
  0xcc   :  { %v474_v3 = vmax.f32 %v466_v2, 0.0 }
  0xce   :  { %v482_v4 = vpack.c.bf16 %v474_v3, %v474_v3 }
  0xcf   :  { %v453_v5 = vpop.f32.mrf.mxu2 }
  0xd0   :  { %488 = vst [vmem:[%s1080_s3 + $0x10] sm:$0xf] %v482_v4  ;;  %v454_v6 = vadd.f32 %v453_v5, %v81_v32 }
  0xd2   :  { %v468_v8 = vadd.f32 %v467_v7, %v454_v6 }
  0xd4   :  { %v479_v9 = vmax.f32 %v468_v8, 0.0 }
  0xd6   :  { %v485_v10 = vpack.c.bf16 %v479_v9, %v479_v9 }
  0xd8   :  { %491 = vst [vmem:[%s1080_s3 + $0x24] sm:$0xf] %v485_v10 }

// kernel: qnetwork_forward.10
= control target key start
LH: loop header
LB: loop body
LE: loop exit
PB: predicated region body
PF: predicated region fallthrough
CT: control target
= control target key end

     0   :  { %v234_v3 = vmov 0   ;;  %vm101_vm0 = vcmask 523264   ;;  %vm158_vm1 = vcmask 1043456   ;;  %vm159_vm2 = vcmask 261124   ;;  %s345_s1 = inlined_call_operand.vmem [shape: bf16[64,160], index: 1, kind: input, shape index: {}]   ;;  %s346_s2 = inlined_call_operand.vmem [shape: f32[32,1], index: 2, kind: input, shape index: {}]   ;;  %s347_s0 = inlined_call_operand.vmem [shape: bf16[32,64], index: 0, kind: input, shape index: {}]   ;;  %s348_s3 = inlined_call_operand.vmem [shape: bf16[32,160], index: 3, kind: output, shape index: {}]  }
   0x1   :  { %v203_v0 = vld [vmem:[%s345_s1 + $0x30] sm:$0xf]  ;;  %v222_v1 = vld [vmem:[%s345_s1 + $0x34] sm:$0xf0]  ;;  %v221_v2 = vld [vmem:[%s345_s1 + $0x34] sm:$0xf]  ;;  %233 = vset.pattern.permute.xlu1 %v234_v3  ;;  %232 = vset.pattern.permute.xlu0 %v234_v3 }
   0x2   :  { %v204_v4 = vor.u32 %v222_v1, %v203_v0  ;;  %v205_v5 = vld [vmem:[%s345_s1 + $0x38] sm:$0xf0]  ;;  %v195_v6 = vld [vmem:[%s345_s1 + $0x20] sm:$0xf]  ;;  %v220_v7 = vld [vmem:[%s345_s1 + $0x24] sm:$0xf0] }
   0x3   :  { %v208_v8 = vor.u32 %v221_v2, %v205_v5  ;;  %v219_v9 = vld [vmem:[%s345_s1 + $0x24] sm:$0xf]  ;;  %v197_v10 = vld [vmem:[%s345_s1 + $0x28] sm:$0xf0]  ;;  %v196_v11 = vor.u32 %v220_v7, %v195_v6  ;;  %v187_v13 = vld [vmem:[%s345_s1 + $0x10] sm:$0xf] }
   0x4   :  { %112 = vmatpush.bf16.msra.mxu0 %v204_v4  ;;  %223 = vmatpush.bf16.msra.mxu2 %v204_v4  ;;  %v200_v12 = vor.u32 %v219_v9, %v197_v10  ;;  %v218_v14 = vld [vmem:[%s345_s1 + $0x14] sm:$0xf0]  ;;  %v217_v15 = vld [vmem:[%s345_s1 + $0x14] sm:$0xf]  ;;  %v189_v16 = vld [vmem:[%s345_s1 + $0x18] sm:$0xf0] }
   0x5   :  { %131 = vmatpush.bf16.msra.mxu1 %v208_v8  ;;  %227 = vmatpush.bf16.msra.mxu3 %v208_v8  ;;  %v29_v17 = vld [vmem:[%s346_s2 + $0x10] sm:$0xff]  ;;  %v27_v18 = vld [vmem:[%s346_s2] sm:$0xff]  ;;  %v188_v19 = vor.u32 %v218_v14, %v187_v13  ;;  %v192_v20 = vor.u32 %v217_v15, %v189_v16  ;;  %v216_v22 = vld [vmem:[%s345_s1 + $0x4] sm:$0xf0] }
   0x6   :  { %v179_v21 = vld [vmem:[%s345_s1] sm:$0xf]  ;;  %v215_v23 = vld [vmem:[%s345_s1 + $0x4] sm:$0xf]  ;;  %v181_v24 = vld [vmem:[%s345_s1 + $0x8] sm:$0xf0]  ;;  %43 = vperm.xlu1 %233, %v29_v17   ;;  %33 = vperm.xlu0 %232, %v27_v18  }
   0x7   :  { %v180_v25 = vor.u32 %v216_v22, %v179_v21  ;;  %v184_v26 = vor.u32 %v215_v23, %v181_v24  ;;  %v213_v27 = vld [vmem:[%s347_s0] sm:$0xff]  ;;  %v214_v28 = vld [vmem:[%s347_s0 + $0x8] sm:$0xff]  ;;  %v30_v29 = vld [vmem:[%s346_s2 + $0x18] sm:$0xff] }
   0x8   :  { %113 = vmatpush.bf16.msra.mxu0 %v196_v11  ;;  %224 = vmatpush.bf16.msra.mxu2 %v196_v11  ;;  %v28_v30 = vld [vmem:[%s346_s2 + $0x8] sm:$0xff]  ;;  %vm321_vm3 = vmor %vm159_vm2, %vm158_vm1 }
   0x9   :  { %132 = vmatpush.bf16.msra.mxu1 %v200_v12  ;;  %228 = vmatpush.bf16.msra.mxu3 %v200_v12 }
   0xc   :  { %114 = vmatpush.bf16.msra.mxu0 %v188_v19  ;;  %225 = vmatpush.bf16.msra.mxu2 %v188_v19 }
   0xd   :  { %133 = vmatpush.bf16.msra.mxu1 %v192_v20  ;;  %229 = vmatpush.bf16.msra.mxu3 %v192_v20 }
   0xe   :  { %48 = vperm.xlu1 %233, %v30_v29   ;;  %38 = vperm.xlu0 %232, %v28_v30  }
  0x10   :  { %115 = vmatpush.bf16.msra.mxu0 %v180_v25  ;;  %226 = vmatpush.bf16.msra.mxu2 %v180_v25 }
  0x11   :  { %134 = vmatpush.bf16.msra.mxu1 %v184_v26  ;;  %230 = vmatpush.bf16.msra.mxu3 %v184_v26 }
  0x13   :  { %209 = vmatmul.msk.bf16.vlgmr.msra.gmra.mxu0 %vm101_vm0, %v213_v27  ;;  %210 = vmatmul.msk.bf16.vlgmr.msra.gmra.mxu2 %vm101_vm0, %v214_v28 }
  0x14   :  { %211 = vmatmul.msk.bf16.vlgmr.msra.gmra.mxu1 %vm101_vm0, %v213_v27  ;;  %212 = vmatmul.msk.bf16.vlgmr.msra.gmra.mxu3 %vm101_vm0, %v214_v28 }
  0x78   :  { %v34_v31 = vpop.permute.xlu0 %33  ;;  %v44_v37 = vpop.permute.xlu1 %43 }
  0x80   :  { %v39_v44 = vpop.permute.xlu0 %38  ;;  %v49_v55 = vpop.permute.xlu1 %48 }
  0x90   :  { %v117_v32 = vpop.f32.mrf.mxu0 }
  0x91   :  { %v118_v33 = vadd.f32 %v117_v32, %v34_v31  ;;  %v136_v34 = vpop.f32.mrf.mxu1 }
  0x92   :  { %v137_v35 = vadd.f32 %v136_v34, %v34_v31 }
  0x93   :  { %v146_v36 = vmax.f32 %v118_v33, 0.0 }
  0x94   :  { %v147_v38 = vmax.f32 %v137_v35, 0.0 }
  0x96   :  { %v154_v40 = vpack.c.bf16 %v147_v38, %v146_v36  ;;  %v122_v41 = vpop.f32.mrf.mxu2 }
  0x97   :  { %v123_v42 = vadd.f32 %v122_v41, %v44_v37  ;;  %v141_v43 = vpop.f32.mrf.mxu3 }
  0x98   :  { %161 = vst.msk [vmem:[%s348_s3] sm:$0xff] %vm321_vm3, %v154_v40  ;;  %v142_v45 = vadd.f32 %v141_v43, %v44_v37  ;;  %v119_v46 = vpop.f32.mrf.mxu0 }
  0x99   :  { %v150_v47 = vmax.f32 %v123_v42, 0.0  ;;  %v120_v48 = vadd.f32 %v119_v46, %v39_v44  ;;  %v138_v49 = vpop.f32.mrf.mxu1 }
  0x9a   :  { %v151_v50 = vmax.f32 %v142_v45, 0.0  ;;  %v139_v51 = vadd.f32 %v138_v49, %v39_v44 }
  0x9b   :  { %v148_v52 = vmax.f32 %v120_v48, 0.0 }
  0x9c   :  { %v156_v53 = vpack.c.bf16 %v151_v50, %v150_v47  ;;  %v149_v54 = vmax.f32 %v139_v51, 0.0 }
  0x9e   :  { %163 = vst.msk [vmem:[%s348_s3 + $0x10] sm:$0xff] %vm321_vm3, %v156_v53  ;;  %v155_v56 = vpack.c.bf16 %v149_v54, %v148_v52  ;;  %v124_v57 = vpop.f32.mrf.mxu2 }
  0x9f   :  { %v125_v58 = vadd.f32 %v124_v57, %v49_v55  ;;  %v143_v59 = vpop.f32.mrf.mxu3 }
  0xa0   :  { %162 = vst.msk [vmem:[%s348_s3 + $0x8] sm:$0xff] %vm321_vm3, %v155_v56  ;;  %v144_v60 = vadd.f32 %v143_v59, %v49_v55 }
  0xa1   :  { %v152_v61 = vmax.f32 %v125_v58, 0.0 }
  0xa2   :  { %v153_v62 = vmax.f32 %v144_v60, 0.0 }
  0xa4   :  { %v157_v63 = vpack.c.bf16 %v153_v62, %v152_v61 }
  0xa6   :  { %164 = vst.msk [vmem:[%s348_s3 + $0x18] sm:$0xff] %vm321_vm3, %v157_v63 }

// kernel: qnetwork_forward.11
= control target key start
LH: loop header
LB: loop body
LE: loop exit
PB: predicated region body
PF: predicated region fallthrough
CT: control target
= control target key end

     0   :  { %vm293_vm0 = vcmask 261120   ;;  %vm426_vm1 = vcmask 1043456   ;;  %vm427_vm2 = vcmask 261124   ;;  %s977_s1 = inlined_call_operand.vmem [shape: bf16[288,160], index: 1, kind: input, shape index: {}]   ;;  %s978_s0 = inlined_call_operand.vmem [shape: bf16[32,288], index: 0, kind: input, shape index: {}]   ;;  %s979_s2 = inlined_call_operand.vmem [shape: f32[32,1], index: 2, kind: input, shape index: {}]   ;;  %s980_s3 = inlined_call_operand.vmem [shape: bf16[32,160], index: 3, kind: output, shape index: {}]  }
   0x1   :  { %v519_v0 = vld [vmem:[%s977_s1 + $0x70] sm:$0xf]  ;;  %v630_v1 = vld [vmem:[%s977_s1 + $0x74] sm:$0xf0]  ;;  %v629_v9 = vld [vmem:[%s977_s1 + $0x74] sm:$0xf] }
   0x2   :  { %v583_v2 = vld [vmem:[%s977_s1 + $0xf0] sm:$0xf]  ;;  %v520_v3 = vor.u32 %v630_v1, %v519_v0  ;;  %v646_v4 = vld [vmem:[%s977_s1 + $0xf4] sm:$0xf0]  ;;  %v521_v10 = vld [vmem:[%s977_s1 + $0x78] sm:$0xf0] }
   0x3   :  { %v599_v5 = vld [vmem:[%s977_s1 + $0x110] sm:$0xf]  ;;  %v650_v6 = vld [vmem:[%s977_s1 + $0x114] sm:$0xf0]  ;;  %v584_v7 = vor.u32 %v646_v4, %v583_v2  ;;  %v511_v11 = vld [vmem:[%s977_s1 + $0x60] sm:$0xf]  ;;  %v524_v12 = vor.u32 %v629_v9, %v521_v10 }
   0x4   :  { %v600_v8 = vor.u32 %v650_v6, %v599_v5  ;;  %300 = vmatpush.bf16.msra.mxu0 %v520_v3  ;;  %v628_v13 = vld [vmem:[%s977_s1 + $0x64] sm:$0xf0]  ;;  %v575_v14 = vld [vmem:[%s977_s1 + $0xe0] sm:$0xf]  ;;  %v627_v20 = vld [vmem:[%s977_s1 + $0x64] sm:$0xf] }
   0x5   :  { %v644_v15 = vld [vmem:[%s977_s1 + $0xe4] sm:$0xf0]  ;;  %319 = vmatpush.bf16.msra.mxu1 %v584_v7  ;;  %v512_v16 = vor.u32 %v628_v13, %v511_v11  ;;  %v591_v18 = vld [vmem:[%s977_s1 + $0x100] sm:$0xf]  ;;  %357 = vmatpush.bf16.msra.mxu3 %v524_v12  ;;  %v513_v22 = vld [vmem:[%s977_s1 + $0x68] sm:$0xf0] }
   0x6   :  { %344 = vmatpush.bf16.msra.mxu2 %v600_v8  ;;  %v576_v17 = vor.u32 %v644_v15, %v575_v14  ;;  %v648_v19 = vld [vmem:[%s977_s1 + $0x104] sm:$0xf0]  ;;  %v611_v24 = vld [vmem:[%s978_s0 + $0x10] sm:$0xf0]  ;;  %v516_v25 = vor.u32 %v627_v20, %v513_v22  ;;  %v585_v27 = vld [vmem:[%s977_s1 + $0xf8] sm:$0xf0] }
   0x7   :  { %v592_v21 = vor.u32 %v648_v19, %v591_v18  ;;  %v447_v23 = vld [vmem:[%s978_s0 + $0x8] sm:$0xf]  ;;  %v645_v26 = vld [vmem:[%s977_s1 + $0xf4] sm:$0xf]  ;;  %v503_v28 = vld [vmem:[%s977_s1 + $0x50] sm:$0xf] }
   0x8   :  { %301 = vmatpush.bf16.msra.mxu0 %v512_v16  ;;  %v740_v29 = vor.u32 %v611_v24, %v447_v23  ;;  %v588_v30 = vor.u32 %v645_v26, %v585_v27  ;;  %v626_v31 = vld [vmem:[%s977_s1 + $0x54] sm:$0xf0]  ;;  %v567_v32 = vld [vmem:[%s977_s1 + $0xd0] sm:$0xf]  ;;  %v625_v36 = vld [vmem:[%s977_s1 + $0x54] sm:$0xf] }
   0x9   :  { %v642_v33 = vld [vmem:[%s977_s1 + $0xd4] sm:$0xf0]  ;;  %320 = vmatpush.bf16.msra.mxu1 %v576_v17  ;;  %v504_v34 = vor.u32 %v626_v31, %v503_v28  ;;  %v505_v37 = vld [vmem:[%s977_s1 + $0x58] sm:$0xf0]  ;;  %v643_v38 = vld [vmem:[%s977_s1 + $0xe4] sm:$0xf]  ;;  %358 = vmatpush.bf16.msra.mxu3 %v516_v25 }
   0xa   :  { %345 = vmatpush.bf16.msra.mxu2 %v592_v21  ;;  %v568_v35 = vor.u32 %v642_v33, %v567_v32  ;;  %v508_v39 = vor.u32 %v625_v36, %v505_v37  ;;  %v577_v40 = vld [vmem:[%s977_s1 + $0xe8] sm:$0xf0]  ;;  %v495_v41 = vld [vmem:[%s977_s1 + $0x40] sm:$0xf]  ;;  %v624_v42 = vld [vmem:[%s977_s1 + $0x44] sm:$0xf0] }
   0xb   :  { %v580_v43 = vor.u32 %v643_v38, %v577_v40  ;;  %v559_v44 = vld [vmem:[%s977_s1 + $0xc0] sm:$0xf]  ;;  %v640_v45 = vld [vmem:[%s977_s1 + $0xc4] sm:$0xf0]  ;;  %v623_v46 = vld [vmem:[%s977_s1 + $0x44] sm:$0xf]  ;;  %v496_v47 = vor.u32 %v624_v42, %v495_v41 }
   0xc   :  { %302 = vmatpush.bf16.msra.mxu0 %v504_v34  ;;  %v497_v48 = vld [vmem:[%s977_s1 + $0x48] sm:$0xf0]  ;;  %v641_v49 = vld [vmem:[%s977_s1 + $0xd4] sm:$0xf]  ;;  %v569_v50 = vld [vmem:[%s977_s1 + $0xd8] sm:$0xf0]  ;;  %v560_v51 = vor.u32 %v640_v45, %v559_v44 }
   0xd   :  { %605 = vmatmul.msk.bf16.vlgmr.msra.gmra.mxu2 %vm293_vm0, %v740_v29  ;;  %321 = vmatpush.bf16.msra.mxu1 %v568_v35  ;;  %v487_v52 = vld [vmem:[%s977_s1 + $0x30] sm:$0xf]  ;;  %v622_v53 = vld [vmem:[%s977_s1 + $0x34] sm:$0xf0]  ;;  %v500_v54 = vor.u32 %v623_v46, %v497_v48  ;;  %v572_v55 = vor.u32 %v641_v49, %v569_v50  ;;  %v621_v58 = vld [vmem:[%s977_s1 + $0x34] sm:$0xf] }
   0xe   :  { %376 = vmatpush.bf16.msrb.mxu2 %v588_v30  ;;  %359 = vmatpush.bf16.msra.mxu3 %v508_v39  ;;  %v551_v56 = vld [vmem:[%s977_s1 + $0xb0] sm:$0xf]  ;;  %v638_v57 = vld [vmem:[%s977_s1 + $0xb4] sm:$0xf0]  ;;  %v489_v59 = vld [vmem:[%s977_s1 + $0x38] sm:$0xf0]  ;;  %v488_v62 = vor.u32 %v622_v53, %v487_v52 }
   0xf   :  { %v639_v60 = vld [vmem:[%s977_s1 + $0xc4] sm:$0xf]  ;;  %v561_v61 = vld [vmem:[%s977_s1 + $0xc8] sm:$0xf0]  ;;  %v552_v63 = vor.u32 %v638_v57, %v551_v56  ;;  %v479_v0 = vld [vmem:[%s977_s1 + $0x20] sm:$0xf]  ;;  %v492_v2 = vor.u32 %v621_v58, %v489_v59 }
  0x10   :  { %303 = vmatpush.bf16.msra.mxu0 %v496_v47  ;;  %v620_v1 = vld [vmem:[%s977_s1 + $0x24] sm:$0xf0]  ;;  %v564_v3 = vor.u32 %v639_v60, %v561_v61  ;;  %v543_v4 = vld [vmem:[%s977_s1 + $0xa0] sm:$0xf]  ;;  %v619_v6 = vld [vmem:[%s977_s1 + $0x24] sm:$0xf] }
  0x11   :  { %322 = vmatpush.bf16.msra.mxu1 %v560_v51  ;;  %v636_v5 = vld [vmem:[%s977_s1 + $0xa4] sm:$0xf0]  ;;  %v481_v7 = vld [vmem:[%s977_s1 + $0x28] sm:$0xf0]  ;;  %v637_v8 = vld [vmem:[%s977_s1 + $0xb4] sm:$0xf]  ;;  %v480_v10 = vor.u32 %v620_v1, %v479_v0 }
  0x12   :  { %377 = vmatpush.bf16.msrb.mxu2 %v580_v43  ;;  %360 = vmatpush.bf16.msra.mxu3 %v500_v54  ;;  %v553_v9 = vld [vmem:[%s977_s1 + $0xb8] sm:$0xf0]  ;;  %v459_v11 = vld [vmem:[%s978_s0 + $0x20] sm:$0xf]  ;;  %v544_v12 = vor.u32 %v636_v5, %v543_v4  ;;  %v614_v13 = vld [vmem:[%s978_s0 + $0x28] sm:$0xf0]  ;;  %v484_v16 = vor.u32 %v619_v6, %v481_v7 }
  0x13   :  { %v471_v14 = vld [vmem:[%s977_s1 + $0x10] sm:$0xf]  ;;  %v618_v15 = vld [vmem:[%s977_s1 + $0x14] sm:$0xf0]  ;;  %v556_v17 = vor.u32 %v637_v8, %v553_v9  ;;  %v617_v20 = vld [vmem:[%s977_s1 + $0x14] sm:$0xf]  ;;  %v867_v24 = vor.u32 %v614_v13, %v459_v11 }
  0x14   :  { %304 = vmatpush.bf16.msra.mxu0 %v488_v62  ;;  %v535_v18 = vld [vmem:[%s977_s1 + $0x90] sm:$0xf]  ;;  %v634_v19 = vld [vmem:[%s977_s1 + $0x94] sm:$0xf0]  ;;  %v473_v21 = vld [vmem:[%s977_s1 + $0x18] sm:$0xf0]  ;;  %v472_v25 = vor.u32 %v618_v15, %v471_v14 }
  0x15   :  { %323 = vmatpush.bf16.msra.mxu1 %v552_v63  ;;  %v635_v22 = vld [vmem:[%s977_s1 + $0xa4] sm:$0xf]  ;;  %v545_v23 = vld [vmem:[%s977_s1 + $0xa8] sm:$0xf0]  ;;  %v463_v26 = vld [vmem:[%s977_s1] sm:$0xf]  ;;  %v536_v28 = vor.u32 %v634_v19, %v535_v18  ;;  %v476_v33 = vor.u32 %v617_v20, %v473_v21 }
  0x16   :  { %378 = vmatpush.bf16.msrb.mxu2 %v572_v55  ;;  %361 = vmatpush.bf16.msra.mxu3 %v492_v2  ;;  %v616_v27 = vld [vmem:[%s977_s1 + $0x4] sm:$0xf0]  ;;  %v527_v30 = vld [vmem:[%s977_s1 + $0x80] sm:$0xf]  ;;  %v615_v32 = vld [vmem:[%s977_s1 + $0x4] sm:$0xf]  ;;  %v548_v34 = vor.u32 %v635_v22, %v545_v23 }
  0x17   :  { %v632_v31 = vld [vmem:[%s977_s1 + $0x84] sm:$0xf0]  ;;  %v465_v35 = vld [vmem:[%s977_s1 + $0x8] sm:$0xf0]  ;;  %v649_v36 = vld [vmem:[%s977_s1 + $0x114] sm:$0xf]  ;;  %v464_v40 = vor.u32 %v616_v27, %v463_v26 }
  0x18   :  { %305 = vmatpush.bf16.msra.mxu0 %v480_v10  ;;  %v601_v37 = vld [vmem:[%s977_s1 + $0x118] sm:$0xf0]  ;;  %v633_v38 = vld [vmem:[%s977_s1 + $0x94] sm:$0xf]  ;;  %v439_v41 = vld [vmem:[%s978_s0] sm:$0xf]  ;;  %v528_v44 = vor.u32 %v632_v31, %v527_v30  ;;  %v468_v50 = vor.u32 %v615_v32, %v465_v35 }
  0x19   :  { %324 = vmatpush.bf16.msra.mxu1 %v544_v12  ;;  %v537_v39 = vld [vmem:[%s977_s1 + $0x98] sm:$0xf0]  ;;  %v610_v42 = vld [vmem:[%s978_s0 + $0x8] sm:$0xf0]  ;;  %v59_v43 = vld [vmem:[%s979_s2] sm:$0xff]  ;;  %v604_v47 = vor.u32 %v649_v36, %v601_v37  ;;  %v656_v48 = vmov 0  }
  0x1a   :  { %379 = vmatpush.bf16.msrb.mxu2 %v564_v3  ;;  %362 = vmatpush.bf16.msra.mxu3 %v484_v16  ;;  %v609_v45 = vld [vmem:[%s978_s0 + $0x4] sm:$0xf]  ;;  %v441_v46 = vld [vmem:[%s978_s0 + $0xc] sm:$0xf0]  ;;  %v540_v51 = vor.u32 %v633_v38, %v537_v39  ;;  %v593_v53 = vld [vmem:[%s977_s1 + $0x108] sm:$0xf0]  ;;  %v440_v54 = vor.u32 %v610_v42, %v439_v41 }
  0x1b   :  { %654 = vset.pattern.permute.xlu0 %v656_v48  ;;  %v61_v49 = vld [vmem:[%s979_s2 + $0x10] sm:$0xff]  ;;  %v647_v52 = vld [vmem:[%s977_s1 + $0x104] sm:$0xf]  ;;  %v529_v56 = vld [vmem:[%s977_s1 + $0x88] sm:$0xf0]  ;;  %655 = vset.pattern.permute.xlu1 %v656_v48  ;;  %v444_v57 = vor.u32 %v609_v45, %v441_v46 }
  0x1c   :  { %306 = vmatpush.bf16.msra.mxu0 %v472_v25  ;;  %v631_v55 = vld [vmem:[%s977_s1 + $0x84] sm:$0xf]  ;;  %65 = vperm.xlu0 %654, %v59_v43   ;;  %v596_v58 = vor.u32 %v647_v52, %v593_v53  ;;  %v60_v60 = vld [vmem:[%s979_s2 + $0x8] sm:$0xff]  ;;  %v62_v61 = vld [vmem:[%s979_s2 + $0x18] sm:$0xff] }
  0x1d   :  { %606 = vmatmul.msk.bf16.gmra.mxu2 %vm293_vm0, %v867_v24  ;;  %325 = vmatpush.bf16.msra.mxu1 %v536_v28  ;;  %v532_v59 = vor.u32 %v631_v55, %v529_v56  ;;  %v451_v62 = vld [vmem:[%s978_s0 + $0x18] sm:$0xf]  ;;  %v613_v63 = vld [vmem:[%s978_s0 + $0x20] sm:$0xf0]  ;;  %v612_v0 = vld [vmem:[%s978_s0 + $0x1c] sm:$0xf] }
  0x1e   :  { %380 = vmatpush.bf16.msrb.mxu2 %v556_v17  ;;  %363 = vmatpush.bf16.msra.mxu3 %v476_v33  ;;  %v453_v1 = vld [vmem:[%s978_s0 + $0x24] sm:$0xf0]  ;;  %v452_v2 = vor.u32 %v613_v63, %v451_v62  ;;  %vm953_vm3 = vmor %vm427_vm2, %vm426_vm1 }
  0x1f   :  { %75 = vperm.xlu1 %655, %v61_v49   ;;  %v456_v3 = vor.u32 %v612_v0, %v453_v1 }
  0x20   :  { %307 = vmatpush.bf16.msra.mxu0 %v464_v40 }
  0x21   :  { %326 = vmatpush.bf16.msra.mxu1 %v528_v44 }
  0x22   :  { %381 = vmatpush.bf16.msrb.mxu2 %v548_v34  ;;  %364 = vmatpush.bf16.msra.mxu3 %v468_v50 }
  0x23   :  { %308 = vmatmul.bf16.vlgmr.msra.gmra.mxu0 %v440_v54 }
  0x24   :  { %401 = vmatpush.bf16.msrb.mxu0 %v604_v47  ;;  %327 = vmatmul.bf16.vlgmr.msra.gmra.mxu1 %v444_v57 }
  0x25   :  { %651 = vmatpush.bf16.msrb.mxu1 %v604_v47  ;;  %365 = vmatmul.bf16.vlgmr.msra.gmra.mxu3 %v440_v54 }
  0x26   :  { %382 = vmatpush.bf16.msrb.mxu2 %v540_v51  ;;  %70 = vperm.xlu0 %654, %v60_v60  }
  0x27   :  { %80 = vperm.xlu1 %655, %v62_v61  }
  0x28   :  { %402 = vmatpush.bf16.msrb.mxu0 %v596_v58 }
  0x29   :  { %652 = vmatpush.bf16.msrb.mxu1 %v596_v58 }
  0x2a   :  { %383 = vmatpush.bf16.msrb.mxu2 %v532_v59 }
  0x2d   :  { %384 = vmatmul.bf16.vlgmr.msrb.gmra.mxu2 %v444_v57 }
  0x33   :  { %313 = vmatmul.bf16.gmra.mxu0 %v452_v2 }
  0x34   :  { %332 = vmatmul.bf16.gmra.mxu1 %v456_v3 }
  0x35   :  { %370 = vmatmul.bf16.gmra.mxu3 %v452_v2 }
  0x3d   :  { %389 = vmatmul.bf16.gmra.mxu2 %v456_v3 }
  0x43   :  { %607 = vmatmul.msk.bf16.vlgmr.msrb.gmra.mxu0 %vm293_vm0, %v740_v29 }
  0x44   :  { %608 = vmatmul.msk.bf16.vlgmr.msrb.gmra.mxu1 %vm293_vm0, %v867_v24 }
  0x8e   :  { %v66_v17 = vpop.permute.xlu0 %65 }
  0x90   :  { %v347_v4 = vpop.f32.mrf.mxu2 }
  0x91   :  { %v76_v18 = vpop.permute.xlu1 %75 }
  0x98   :  { %v349_v5 = vpop.f32.mrf.mxu2  ;;  %v71_v26 = vpop.permute.xlu0 %70 }
  0x99   :  { %v81_v30 = vpop.permute.xlu1 %80 }
  0xa0   :  { %v352_v6 = vpop.f32.mrf.mxu2  ;;  %v309_v7 = vpop.f32.mrf.mxu0 }
  0xa1   :  { %v328_v8 = vpop.f32.mrf.mxu1  ;;  %v310_v19 = vadd.f32 %v309_v7, %v66_v17 }
  0xa3   :  { %v329_v24 = vadd.f32 %v328_v8, %v310_v19 }
  0xa5   :  { %v348_v31 = vadd.f32 %v347_v4, %v329_v24 }
  0xa7   :  { %v414_v42 = vmax.f32 %v348_v31, 0.0 }
  0xa8   :  { %v354_v9 = vpop.f32.mrf.mxu2  ;;  %v366_v10 = vpop.f32.mrf.mxu3 }
  0xa9   :  { %v311_v11 = vpop.f32.mrf.mxu0  ;;  %v330_v12 = vpop.f32.mrf.mxu1  ;;  %v367_v25 = vadd.f32 %v366_v10, %v66_v17 }
  0xaa   :  { %v312_v32 = vadd.f32 %v311_v11, %v71_v26 }
  0xac   :  { %v331_v43 = vadd.f32 %v330_v12, %v312_v32 }
  0xae   :  { %v350_v54 = vadd.f32 %v349_v5, %v331_v43 }
  0xb0   :  { %v385_v13 = vpop.f32.mrf.mxu2  ;;  %v368_v14 = vpop.f32.mrf.mxu3  ;;  %v416_v63 = vmax.f32 %v350_v54, 0.0 }
  0xb1   :  { %v314_v15 = vpop.f32.mrf.mxu0  ;;  %v333_v16 = vpop.f32.mrf.mxu1  ;;  %v386_v33 = vadd.f32 %v385_v13, %v367_v25  ;;  %v369_v50 = vadd.f32 %v368_v14, %v71_v26 }
  0xb2   :  { %v315_v20 = vadd.f32 %v314_v15, %v76_v18 }
  0xb4   :  { %v334_v27 = vadd.f32 %v333_v16, %v315_v20 }
  0xb6   :  { %v353_v35 = vadd.f32 %v352_v6, %v334_v27 }
  0xb8   :  { %v387_v29 = vpop.f32.mrf.mxu2  ;;  %v371_v22 = vpop.f32.mrf.mxu3  ;;  %v418_v46 = vmax.f32 %v353_v35, 0.0 }
  0xb9   :  { %v316_v21 = vpop.f32.mrf.mxu0  ;;  %v335_v23 = vpop.f32.mrf.mxu1  ;;  %v372_v28 = vadd.f32 %v371_v22, %v76_v18  ;;  %v388_v55 = vadd.f32 %v387_v29, %v369_v50 }
  0xba   :  { %v317_v36 = vadd.f32 %v316_v21, %v81_v30 }
  0xbc   :  { %v336_v47 = vadd.f32 %v335_v23, %v317_v36 }
  0xbe   :  { %v355_v57 = vadd.f32 %v354_v9, %v336_v47 }
  0xc0   :  { %v390_v34 = vpop.f32.mrf.mxu2  ;;  %v373_v44 = vpop.f32.mrf.mxu3  ;;  %v420_v1 = vmax.f32 %v355_v57, 0.0 }
  0xc1   :  { %v391_v37 = vadd.f32 %v390_v34, %v372_v28  ;;  %v404_v38 = vpop.f32.mrf.mxu0  ;;  %v409_v40 = vpop.f32.mrf.mxu1  ;;  %v374_v52 = vadd.f32 %v373_v44, %v81_v30 }
  0xc2   :  { %v405_v39 = vadd.f32 %v404_v38, %v386_v33 }
  0xc3   :  { %v410_v41 = vadd.f32 %v409_v40, %v391_v37 }
  0xc4   :  { %v415_v45 = vmax.f32 %v405_v39, 0.0 }
  0xc5   :  { %v419_v49 = vmax.f32 %v410_v41, 0.0 }
  0xc6   :  { %v422_v51 = vpack.c.bf16 %v415_v45, %v414_v42 }
  0xc7   :  { %v424_v53 = vpack.c.bf16 %v419_v49, %v418_v46 }
  0xc8   :  { %429 = vst.msk [vmem:[%s980_s3] sm:$0xff] %vm953_vm3, %v422_v51  ;;  %v392_v56 = vpop.f32.mrf.mxu2 }
  0xc9   :  { %431 = vst.msk [vmem:[%s980_s3 + $0x10] sm:$0xff] %vm953_vm3, %v424_v53  ;;  %v393_v58 = vadd.f32 %v392_v56, %v374_v52  ;;  %v406_v59 = vpop.f32.mrf.mxu0  ;;  %v411_v61 = vpop.f32.mrf.mxu1 }
  0xca   :  { %v407_v60 = vadd.f32 %v406_v59, %v388_v55 }
  0xcb   :  { %v412_v62 = vadd.f32 %v411_v61, %v393_v58 }
  0xcc   :  { %v417_v0 = vmax.f32 %v407_v60, 0.0 }
  0xcd   :  { %v421_v2 = vmax.f32 %v412_v62, 0.0 }
  0xce   :  { %v423_v3 = vpack.c.bf16 %v417_v0, %v416_v63 }
  0xcf   :  { %v425_v4 = vpack.c.bf16 %v421_v2, %v420_v1 }
  0xd0   :  { %430 = vst.msk [vmem:[%s980_s3 + $0x8] sm:$0xff] %vm953_vm3, %v423_v3 }
  0xd1   :  { %432 = vst.msk [vmem:[%s980_s3 + $0x18] sm:$0xff] %vm953_vm3, %v425_v4 }

// kernel: qnetwork_forward.12
= control target key start
LH: loop header
LB: loop body
LE: loop exit
PB: predicated region body
PF: predicated region fallthrough
CT: control target
= control target key end

     0   :  { %v803_v8 = vmov 0   ;;  %vm546_vm0 = vcmask 76800   ;;  %s1072_s1 = inlined_call_operand.vmem [shape: bf16[512,10], index: 1, kind: input, shape index: {}]   ;;  %s1073_s2 = inlined_call_operand.vmem [shape: f32[64,1], index: 2, kind: input, shape index: {}]   ;;  %s1074_s0 = inlined_call_operand.vmem [shape: bf16[64,512], index: 0, kind: input, shape index: {}]   ;;  %s1075_s3 = inlined_call_operand.vmem [shape: bf16[64,10], index: 3, kind: output, shape index: {}]  }
   0x1   :  { %v774_v0 = vld [vmem:[%s1072_s1 + $0x38] sm:$0xff]  ;;  %v773_v4 = vld [vmem:[%s1072_s1 + $0x30] sm:$0xff]  ;;  %800 = vset.pattern.permute.xlu0 %v803_v8  ;;  %801 = vset.pattern.permute.xlu1 %v803_v8  ;;  %v772_v9 = vld [vmem:[%s1072_s1 + $0x28] sm:$0xff] }
   0x2   :  { %v782_v1 = vld [vmem:[%s1072_s1 + $0x78] sm:$0xff]  ;;  %414 = vmatpush.bf16.msra.mxu0 %v774_v0  ;;  %v781_v5 = vld [vmem:[%s1072_s1 + $0x70] sm:$0xff]  ;;  %802 = vset.pattern.permute.xlu2 %v803_v8  ;;  %v780_v10 = vld [vmem:[%s1072_s1 + $0x68] sm:$0xff] }
   0x3   :  { %v790_v2 = vld [vmem:[%s1072_s1 + $0xb8] sm:$0xff]  ;;  %443 = vmatpush.bf16.msra.mxu1 %v782_v1  ;;  %v789_v6 = vld [vmem:[%s1072_s1 + $0xb0] sm:$0xff]  ;;  %v788_v11 = vld [vmem:[%s1072_s1 + $0xa8] sm:$0xff] }
   0x4   :  { %v798_v3 = vld [vmem:[%s1072_s1 + $0xf8] sm:$0xff]  ;;  %472 = vmatpush.bf16.msra.mxu2 %v790_v2  ;;  %v797_v7 = vld [vmem:[%s1072_s1 + $0xf0] sm:$0xff]  ;;  %v796_v12 = vld [vmem:[%s1072_s1 + $0xe8] sm:$0xff] }
   0x5   :  { %501 = vmatpush.bf16.msra.mxu3 %v798_v3  ;;  %v771_v13 = vld [vmem:[%s1072_s1 + $0x20] sm:$0xff]  ;;  %v770_v18 = vld [vmem:[%s1072_s1 + $0x18] sm:$0xff]  ;;  %v769_v22 = vld [vmem:[%s1072_s1 + $0x10] sm:$0xff] }
   0x6   :  { %415 = vmatpush.bf16.msra.mxu0 %v773_v4  ;;  %v779_v14 = vld [vmem:[%s1072_s1 + $0x60] sm:$0xff]  ;;  %v778_v19 = vld [vmem:[%s1072_s1 + $0x58] sm:$0xff]  ;;  %v777_v23 = vld [vmem:[%s1072_s1 + $0x50] sm:$0xff] }
   0x7   :  { %444 = vmatpush.bf16.msra.mxu1 %v781_v5  ;;  %v787_v15 = vld [vmem:[%s1072_s1 + $0xa0] sm:$0xff]  ;;  %v786_v20 = vld [vmem:[%s1072_s1 + $0x98] sm:$0xff]  ;;  %v96_v24 = vld [vmem:[%s1073_s2 + $0x10] sm:$0xff] }
   0x8   :  { %473 = vmatpush.bf16.msra.mxu2 %v789_v6  ;;  %v795_v16 = vld [vmem:[%s1072_s1 + $0xe0] sm:$0xff]  ;;  %v794_v21 = vld [vmem:[%s1072_s1 + $0xd8] sm:$0xff]  ;;  %v785_v25 = vld [vmem:[%s1072_s1 + $0x90] sm:$0xff]  ;;  %114 = vperm.xlu1 %801, %v96_v24  }
   0x9   :  { %502 = vmatpush.bf16.msra.mxu3 %v797_v7  ;;  %v94_v17 = vld [vmem:[%s1073_s2] sm:$0xff]  ;;  %v793_v26 = vld [vmem:[%s1072_s1 + $0xd0] sm:$0xff]  ;;  %v95_v27 = vld [vmem:[%s1073_s2 + $0x8] sm:$0xff] }
   0xa   :  { %416 = vmatpush.bf16.msra.mxu0 %v772_v9  ;;  %104 = vperm.xlu0 %800, %v94_v17   ;;  %v768_v28 = vld [vmem:[%s1072_s1 + $0x8] sm:$0xff]  ;;  %v767_v32 = vld [vmem:[%s1072_s1] sm:$0xff]  ;;  %v753_v37 = vld [vmem:[%s1074_s0 + $0xc] sm:$0xf0] }
   0xb   :  { %445 = vmatpush.bf16.msra.mxu1 %v780_v10  ;;  %v776_v29 = vld [vmem:[%s1072_s1 + $0x48] sm:$0xff]  ;;  %v775_v33 = vld [vmem:[%s1072_s1 + $0x40] sm:$0xff]  ;;  %v563_v39 = vld [vmem:[%s1074_s0 + $0x10] sm:$0xf0] }
   0xc   :  { %474 = vmatpush.bf16.msra.mxu2 %v788_v11  ;;  %v784_v30 = vld [vmem:[%s1072_s1 + $0x88] sm:$0xff]  ;;  %v783_v34 = vld [vmem:[%s1072_s1 + $0x80] sm:$0xff]  ;;  %v754_v41 = vld [vmem:[%s1074_s0 + $0x14] sm:$0xf0] }
   0xd   :  { %503 = vmatpush.bf16.msra.mxu3 %v796_v12  ;;  %v792_v31 = vld [vmem:[%s1072_s1 + $0xc8] sm:$0xff]  ;;  %v791_v35 = vld [vmem:[%s1072_s1 + $0xc0] sm:$0xff]  ;;  %v571_v43 = vld [vmem:[%s1074_s0 + $0x18] sm:$0xf0] }
   0xe   :  { %417 = vmatpush.bf16.msra.mxu0 %v771_v13  ;;  %v561_v36 = vld [vmem:[%s1074_s0] sm:$0xf]  ;;  %v751_v38 = vld [vmem:[%s1074_s0 + $0x4] sm:$0xf]  ;;  %v569_v40 = vld [vmem:[%s1074_s0 + $0x8] sm:$0xf] }
   0xf   :  { %446 = vmatpush.bf16.msra.mxu1 %v779_v14  ;;  %v752_v42 = vld [vmem:[%s1074_s0 + $0xc] sm:$0xf]  ;;  %v562_v44 = vor.u32 %v753_v37, %v561_v36  ;;  %v566_v45 = vor.u32 %v751_v38, %v563_v39  ;;  %v570_v46 = vor.u32 %v754_v41, %v569_v40  ;;  %v97_v48 = vld [vmem:[%s1073_s2 + $0x18] sm:$0xff]  ;;  %v577_v49 = vld [vmem:[%s1074_s0 + $0x20] sm:$0xf] }
  0x10   :  { %475 = vmatpush.bf16.msra.mxu2 %v787_v15  ;;  %v574_v47 = vor.u32 %v752_v42, %v571_v43  ;;  %119 = vperm.xlu1 %801, %v97_v48   ;;  %v757_v50 = vld [vmem:[%s1074_s0 + $0x2c] sm:$0xf0]  ;;  %v755_v51 = vld [vmem:[%s1074_s0 + $0x24] sm:$0xf]  ;;  %v579_v52 = vld [vmem:[%s1074_s0 + $0x30] sm:$0xf0] }
  0x11   :  { %504 = vmatpush.bf16.msra.mxu3 %v795_v16  ;;  %v585_v53 = vld [vmem:[%s1074_s0 + $0x28] sm:$0xf]  ;;  %v758_v54 = vld [vmem:[%s1074_s0 + $0x34] sm:$0xf0]  ;;  %v756_v55 = vld [vmem:[%s1074_s0 + $0x2c] sm:$0xf]  ;;  %v578_v57 = vor.u32 %v757_v50, %v577_v49  ;;  %v582_v58 = vor.u32 %v755_v51, %v579_v52 }
  0x12   :  { %418 = vmatpush.bf16.msra.mxu0 %v770_v18  ;;  %109 = vperm.xlu0 %800, %v95_v27   ;;  %v587_v56 = vld [vmem:[%s1074_s0 + $0x38] sm:$0xf0]  ;;  %v586_v59 = vor.u32 %v758_v54, %v585_v53  ;;  %v100_v62 = vld [vmem:[%s1073_s2 + $0x30] sm:$0xff]  ;;  %v98_v63 = vld [vmem:[%s1073_s2 + $0x20] sm:$0xff] }
  0x13   :  { %447 = vmatpush.bf16.msra.mxu1 %v778_v19  ;;  %v590_v60 = vor.u32 %v756_v55, %v587_v56  ;;  %v101_v61 = vld [vmem:[%s1073_s2 + $0x38] sm:$0xff]  ;;  %124 = vperm.xlu2 %802, %v98_v63   ;;  %v593_v0 = vld [vmem:[%s1074_s0 + $0x40] sm:$0xf]  ;;  %v761_v1 = vld [vmem:[%s1074_s0 + $0x4c] sm:$0xf0] }
  0x14   :  { %476 = vmatpush.bf16.msra.mxu2 %v786_v20  ;;  %v99_v2 = vld [vmem:[%s1073_s2 + $0x28] sm:$0xff]  ;;  %v759_v3 = vld [vmem:[%s1074_s0 + $0x44] sm:$0xf]  ;;  %v595_v4 = vld [vmem:[%s1074_s0 + $0x50] sm:$0xf0]  ;;  %v594_v9 = vor.u32 %v761_v1, %v593_v0 }
  0x15   :  { %505 = vmatpush.bf16.msra.mxu3 %v794_v21  ;;  %v601_v5 = vld [vmem:[%s1074_s0 + $0x48] sm:$0xf]  ;;  %v762_v6 = vld [vmem:[%s1074_s0 + $0x54] sm:$0xf0]  ;;  %v760_v7 = vld [vmem:[%s1074_s0 + $0x4c] sm:$0xf]  ;;  %v598_v10 = vor.u32 %v759_v3, %v595_v4 }
  0x16   :  { %419 = vmatpush.bf16.msra.mxu0 %v769_v22  ;;  %v603_v8 = vld [vmem:[%s1074_s0 + $0x58] sm:$0xf0]  ;;  %v602_v11 = vor.u32 %v762_v6, %v601_v5  ;;  %v609_v13 = vld [vmem:[%s1074_s0 + $0x60] sm:$0xf]  ;;  %v765_v14 = vld [vmem:[%s1074_s0 + $0x6c] sm:$0xf0] }
  0x17   :  { %448 = vmatpush.bf16.msra.mxu1 %v777_v23  ;;  %v606_v12 = vor.u32 %v760_v7, %v603_v8  ;;  %v763_v15 = vld [vmem:[%s1074_s0 + $0x64] sm:$0xf]  ;;  %v611_v16 = vld [vmem:[%s1074_s0 + $0x70] sm:$0xf0]  ;;  %v617_v17 = vld [vmem:[%s1074_s0 + $0x68] sm:$0xf]  ;;  %v610_v21 = vor.u32 %v765_v14, %v609_v13 }
  0x18   :  { %477 = vmatpush.bf16.msra.mxu2 %v785_v25  ;;  %139 = vperm.xlu1 %801, %v101_v61   ;;  %v766_v18 = vld [vmem:[%s1074_s0 + $0x74] sm:$0xf0]  ;;  %v764_v19 = vld [vmem:[%s1074_s0 + $0x6c] sm:$0xf]  ;;  %v619_v20 = vld [vmem:[%s1074_s0 + $0x78] sm:$0xf0]  ;;  %v614_v22 = vor.u32 %v763_v15, %v611_v16 }
  0x19   :  { %506 = vmatpush.bf16.msra.mxu3 %v793_v26  ;;  %v618_v23 = vor.u32 %v766_v18, %v617_v17  ;;  %v622_v24 = vor.u32 %v764_v19, %v619_v20 }
  0x1a   :  { %420 = vmatpush.bf16.msra.mxu0 %v768_v28  ;;  %134 = vperm.xlu0 %800, %v100_v62  }
  0x1b   :  { %449 = vmatpush.bf16.msra.mxu1 %v776_v29  ;;  %129 = vperm.xlu2 %802, %v99_v2  }
  0x1c   :  { %478 = vmatpush.bf16.msra.mxu2 %v784_v30 }
  0x1d   :  { %507 = vmatpush.bf16.msra.mxu3 %v792_v31 }
  0x1e   :  { %421 = vmatpush.bf16.msra.mxu0 %v767_v32 }
  0x1f   :  { %450 = vmatpush.bf16.msra.mxu1 %v775_v33 }
  0x20   :  { %479 = vmatpush.bf16.msra.mxu2 %v783_v34 }
  0x21   :  { %508 = vmatpush.bf16.msra.mxu3 %v791_v35  ;;  %422 = vmatmul.bf16.vlgmr.msra.gmra.mxu0 %v562_v44 }
  0x22   :  { %451 = vmatmul.bf16.vlgmr.msra.gmra.mxu1 %v566_v45 }
  0x23   :  { %480 = vmatmul.bf16.vlgmr.msra.gmra.mxu2 %v570_v46 }
  0x24   :  { %509 = vmatmul.bf16.vlgmr.msra.gmra.mxu3 %v574_v47 }
  0x31   :  { %427 = vmatmul.bf16.gmra.mxu0 %v578_v57 }
  0x32   :  { %456 = vmatmul.bf16.gmra.mxu1 %v582_v58 }
  0x33   :  { %485 = vmatmul.bf16.gmra.mxu2 %v586_v59 }
  0x34   :  { %514 = vmatmul.bf16.gmra.mxu3 %v590_v60 }
  0x41   :  { %432 = vmatmul.bf16.gmra.mxu0 %v594_v9 }
  0x42   :  { %461 = vmatmul.bf16.gmra.mxu1 %v598_v10 }
  0x43   :  { %490 = vmatmul.bf16.gmra.mxu2 %v602_v11 }
  0x44   :  { %519 = vmatmul.bf16.gmra.mxu3 %v606_v12 }
  0x51   :  { %437 = vmatmul.bf16.gmra.mxu0 %v610_v21 }
  0x52   :  { %466 = vmatmul.bf16.gmra.mxu1 %v614_v22 }
  0x53   :  { %495 = vmatmul.bf16.gmra.mxu2 %v618_v23 }
  0x54   :  { %524 = vmatmul.bf16.gmra.mxu3 %v622_v24 }
  0x6d   :  { %v125_v61 = vpop.permute.xlu2 %124 }
  0x75   :  { %v130_v10 = vpop.permute.xlu2 %129 }
  0x7a   :  { %v115_v39 = vpop.permute.xlu1 %114 }
  0x7c   :  { %v105_v25 = vpop.permute.xlu0 %104 }
  0x82   :  { %v120_v52 = vpop.permute.xlu1 %119 }
  0x84   :  { %v110_v30 = vpop.permute.xlu0 %109 }
  0x9e   :  { %v423_v26 = vpop.f32.mrf.mxu0 }
  0x9f   :  { %v452_v27 = vpop.f32.mrf.mxu1  ;;  %v424_v28 = vadd.f32 %v423_v26, %v105_v25  ;;  %v135_v25 = vpop.permute.xlu0 %134 }
  0xa1   :  { %v453_v29 = vadd.f32 %v452_v27, %v424_v28 }
  0xa6   :  { %v481_v31 = vpop.f32.mrf.mxu2  ;;  %v425_v34 = vpop.f32.mrf.mxu0 }
  0xa7   :  { %v510_v32 = vpop.f32.mrf.mxu3  ;;  %v482_v33 = vadd.f32 %v481_v31, %v453_v29  ;;  %v454_v35 = vpop.f32.mrf.mxu1  ;;  %v426_v37 = vadd.f32 %v425_v34, %v110_v30 }
  0xa9   :  { %v511_v36 = vadd.f32 %v510_v32, %v482_v33  ;;  %v455_v41 = vadd.f32 %v454_v35, %v426_v37 }
  0xab   :  { %v530_v38 = vmax.f32 %v511_v36, 0.0  ;;  %v140_v36 = vpop.permute.xlu1 %139 }
  0xad   :  { %v538_v40 = vpack.c.bf16 %v530_v38, %v530_v38 }
  0xae   :  { %v483_v42 = vpop.f32.mrf.mxu2  ;;  %v428_v45 = vpop.f32.mrf.mxu0 }
  0xaf   :  { %v512_v43 = vpop.f32.mrf.mxu3  ;;  %547 = vst.msk [vmem:[%s1075_s3] sm:$0xf] %vm546_vm0, %v538_v40  ;;  %v484_v44 = vadd.f32 %v483_v42, %v455_v41  ;;  %v457_v46 = vpop.f32.mrf.mxu1  ;;  %v429_v47 = vadd.f32 %v428_v45, %v115_v39 }
  0xb1   :  { %v513_v48 = vadd.f32 %v512_v43, %v484_v44  ;;  %v458_v50 = vadd.f32 %v457_v46, %v429_v47 }
  0xb3   :  { %v531_v49 = vmax.f32 %v513_v48, 0.0 }
  0xb5   :  { %v539_v51 = vpack.c.bf16 %v531_v49, %v531_v49 }
  0xb6   :  { %v486_v53 = vpop.f32.mrf.mxu2  ;;  %v430_v56 = vpop.f32.mrf.mxu0 }
  0xb7   :  { %v515_v54 = vpop.f32.mrf.mxu3  ;;  %548 = vst.msk [vmem:[%s1075_s3 + $0x4] sm:$0xf] %vm546_vm0, %v539_v51  ;;  %v487_v55 = vadd.f32 %v486_v53, %v458_v50  ;;  %v459_v57 = vpop.f32.mrf.mxu1  ;;  %v431_v59 = vadd.f32 %v430_v56, %v120_v52 }
  0xb9   :  { %v516_v58 = vadd.f32 %v515_v54, %v487_v55  ;;  %v460_v63 = vadd.f32 %v459_v57, %v431_v59 }
  0xbb   :  { %v532_v60 = vmax.f32 %v516_v58, 0.0 }
  0xbd   :  { %v540_v62 = vpack.c.bf16 %v532_v60, %v532_v60 }
  0xbe   :  { %v488_v0 = vpop.f32.mrf.mxu2  ;;  %v433_v3 = vpop.f32.mrf.mxu0 }
  0xbf   :  { %v517_v1 = vpop.f32.mrf.mxu3  ;;  %549 = vst.msk [vmem:[%s1075_s3 + $0x8] sm:$0xf] %vm546_vm0, %v540_v62  ;;  %v489_v2 = vadd.f32 %v488_v0, %v460_v63  ;;  %v462_v4 = vpop.f32.mrf.mxu1  ;;  %v434_v5 = vadd.f32 %v433_v3, %v125_v61 }
  0xc1   :  { %v518_v6 = vadd.f32 %v517_v1, %v489_v2  ;;  %v463_v8 = vadd.f32 %v462_v4, %v434_v5 }
  0xc3   :  { %v533_v7 = vmax.f32 %v518_v6, 0.0 }
  0xc5   :  { %v541_v9 = vpack.c.bf16 %v533_v7, %v533_v7 }
  0xc6   :  { %v491_v11 = vpop.f32.mrf.mxu2  ;;  %v435_v14 = vpop.f32.mrf.mxu0 }
  0xc7   :  { %v520_v12 = vpop.f32.mrf.mxu3  ;;  %550 = vst.msk [vmem:[%s1075_s3 + $0xc] sm:$0xf] %vm546_vm0, %v541_v9  ;;  %v492_v13 = vadd.f32 %v491_v11, %v463_v8  ;;  %v464_v15 = vpop.f32.mrf.mxu1  ;;  %v436_v17 = vadd.f32 %v435_v14, %v130_v10 }
  0xc9   :  { %v521_v16 = vadd.f32 %v520_v12, %v492_v13  ;;  %v465_v20 = vadd.f32 %v464_v15, %v436_v17 }
  0xcb   :  { %v534_v18 = vmax.f32 %v521_v16, 0.0 }
  0xcd   :  { %v542_v19 = vpack.c.bf16 %v534_v18, %v534_v18 }
  0xce   :  { %v493_v21 = vpop.f32.mrf.mxu2  ;;  %v438_v24 = vpop.f32.mrf.mxu0 }
  0xcf   :  { %v522_v22 = vpop.f32.mrf.mxu3  ;;  %551 = vst.msk [vmem:[%s1075_s3 + $0x10] sm:$0xf] %vm546_vm0, %v542_v19  ;;  %v494_v23 = vadd.f32 %v493_v21, %v465_v20  ;;  %v439_v27 = vadd.f32 %v438_v24, %v135_v25  ;;  %v467_v28 = vpop.f32.mrf.mxu1 }
  0xd1   :  { %v523_v26 = vadd.f32 %v522_v22, %v494_v23  ;;  %v468_v31 = vadd.f32 %v467_v28, %v439_v27 }
  0xd3   :  { %v535_v29 = vmax.f32 %v523_v26, 0.0 }
  0xd5   :  { %v543_v30 = vpack.c.bf16 %v535_v29, %v535_v29 }
  0xd6   :  { %v496_v32 = vpop.f32.mrf.mxu2  ;;  %v440_v35 = vpop.f32.mrf.mxu0 }
  0xd7   :  { %v525_v33 = vpop.f32.mrf.mxu3  ;;  %552 = vst.msk [vmem:[%s1075_s3 + $0x14] sm:$0xf] %vm546_vm0, %v543_v30  ;;  %v497_v34 = vadd.f32 %v496_v32, %v468_v31  ;;  %v441_v38 = vadd.f32 %v440_v35, %v140_v36  ;;  %v469_v40 = vpop.f32.mrf.mxu1 }
  0xd9   :  { %v526_v37 = vadd.f32 %v525_v33, %v497_v34  ;;  %v470_v42 = vadd.f32 %v469_v40, %v441_v38 }
  0xdb   :  { %v536_v39 = vmax.f32 %v526_v37, 0.0 }
  0xdd   :  { %v544_v41 = vpack.c.bf16 %v536_v39, %v536_v39 }
  0xde   :  { %v498_v43 = vpop.f32.mrf.mxu2 }
  0xdf   :  { %553 = vst.msk [vmem:[%s1075_s3 + $0x18] sm:$0xf] %vm546_vm0, %v544_v41  ;;  %v499_v44 = vadd.f32 %v498_v43, %v470_v42  ;;  %v527_v45 = vpop.f32.mrf.mxu3 }
  0xe1   :  { %v528_v46 = vadd.f32 %v527_v45, %v499_v44 }
  0xe3   :  { %v537_v47 = vmax.f32 %v528_v46, 0.0 }
  0xe5   :  { %v545_v48 = vpack.c.bf16 %v537_v47, %v537_v47 }
  0xe7   :  { %554 = vst.msk [vmem:[%s1075_s3 + $0x1c] sm:$0xf] %vm546_vm0, %v545_v48 }

// kernel: qnetwork_forward.13
= control target key start
LH: loop header
LB: loop body
LE: loop exit
PB: predicated region body
PF: predicated region fallthrough
CT: control target
= control target key end

     0   :  { %vm366_vm0 = vcmask 523264   ;;  %vm1057_vm1 = vcmask 1024   ;;  %s1972_s2 = inlined_call_operand.vmem [shape: bf16[576,128], index: 2, kind: input, shape index: {}]   ;;  %s1973_s0 = inlined_call_operand.vmem [shape: bf16[1,576], index: 0, kind: input, shape index: {}]   ;;  %s1974_s4 = inlined_call_operand.vmem [shape: bf16[128,128], index: 4, kind: input, shape index: {}]   ;;  %s1975_s6 = inlined_call_operand.vmem [shape: bf16[128,128], index: 6, kind: input, shape index: {}]   ;;  %s1976_s3 = inlined_call_operand.vmem [shape: f32[1,128], index: 3, kind: input, shape index: {}]   ;;  %s1977_s8 = inlined_call_operand.vmem [shape: bf16[128,128], index: 8, kind: input, shape index: {}]   ;;  %s1978_s5 = inlined_call_operand.vmem [shape: f32[1,128], index: 5, kind: input, shape index: {}]   ;;  %s1979_s10 = inlined_call_operand.vmem [shape: bf16[128,128], index: 10, kind: input, shape index: {}]   ;;  %s1980_s11 = inlined_call_operand.vmem [shape: bf16[64,128], index: 11, kind: input, shape index: {}]   ;;  %s1981_s1 = inlined_call_operand.vmem [shape: bf16[2,64], index: 1, kind: input, shape index: {}]   ;;  %s1982_s7 = inlined_call_operand.vmem [shape: f32[1,128], index: 7, kind: input, shape index: {}]   ;;  %s1983_s12 = inlined_call_operand.vmem [shape: f32[1,128], index: 12, kind: input, shape index: {}]   ;;  %s1984_s13 = inlined_call_operand.vmem [shape: bf16[128,128], index: 13, kind: input, shape index: {}]   ;;  %s1985_s9 = inlined_call_operand.vmem [shape: f32[1,128], index: 9, kind: input, shape index: {}]   ;;  %s1986_s14 = inlined_call_operand.vmem [shape: f32[1,128], index: 14, kind: input, shape index: {}]   ;;  %s1987_s15 = inlined_call_operand.vmem [shape: bf16[128,128], index: 15, kind: input, shape index: {}]   ;;  %s1988_s16 = inlined_call_operand.vmem [shape: f32[1,128], index: 16, kind: input, shape index: {}]   ;;  %s1989_s17 = inlined_call_operand.vmem [shape: bf16[128,1], index: 17, kind: input, shape index: {}]   ;;  %s1990_s18 = inlined_call_operand.<no memory space> [shape: f32[1,1], index: 18, kind: input, shape index: {}]   ;;  %s1991_s19 = inlined_call_operand.vmem [shape: f32[2,1], index: 19, kind: output, shape index: {}]  }
   0x1   :  { %1995 = sst [smem:[#allocation3_spill]] %s1972_s2  ;;  %v138_v55 = vld [vmem:[%s1976_s3] sm:$0x1] }
   0x2   :  { %1996 = sst [smem:[#allocation4_spill]] %s1973_s0 }
   0x3   :  { %1997 = sst [smem:[#allocation5_spill]] %s1974_s4 }
   0x4   :  { %1998 = sst [smem:[#allocation6_spill]] %s1975_s6 }
   0x5   :  { %s1999_s20 = sld [smem:[#allocation3_spill]] }
   0x6   :  { %s2000_s21 = sld [smem:[#allocation4_spill]] }
   0x7   :  { %s2001_s24 = sld [smem:[#allocation5_spill]] }
   0x8   :  { %s2002_s26 = sld [smem:[#allocation6_spill]] }
   0xb   :  { %v1456_v0 = vld [vmem:[%s1999_s20 + $0x38] sm:$0xff]  ;;  %v1455_v4 = vld [vmem:[%s1999_s20 + $0x30] sm:$0xff]  ;;  %v1454_v8 = vld [vmem:[%s1999_s20 + $0x28] sm:$0xff] }
   0xc   :  { %v1464_v1 = vld [vmem:[%s1999_s20 + $0x78] sm:$0xff]  ;;  %369 = vmatpush.bf16.msra.mxu0 %v1456_v0  ;;  %v1463_v5 = vld [vmem:[%s1999_s20 + $0x70] sm:$0xff]  ;;  %v1462_v9 = vld [vmem:[%s1999_s20 + $0x68] sm:$0xff] }
   0xd   :  { %v1472_v2 = vld [vmem:[%s1999_s20 + $0xb8] sm:$0xff]  ;;  %382 = vmatpush.bf16.msra.mxu1 %v1464_v1  ;;  %v1471_v6 = vld [vmem:[%s1999_s20 + $0xb0] sm:$0xff]  ;;  %v1470_v10 = vld [vmem:[%s1999_s20 + $0xa8] sm:$0xff] }
   0xe   :  { %v1480_v3 = vld [vmem:[%s1999_s20 + $0xf8] sm:$0xff]  ;;  %395 = vmatpush.bf16.msra.mxu2 %v1472_v2  ;;  %v1479_v7 = vld [vmem:[%s1999_s20 + $0xf0] sm:$0xff]  ;;  %v1478_v11 = vld [vmem:[%s1999_s20 + $0xe8] sm:$0xff] }
   0xf   :  { %408 = vmatpush.bf16.msra.mxu3 %v1480_v3  ;;  %v1453_v12 = vld [vmem:[%s1999_s20 + $0x20] sm:$0xff]  ;;  %v1452_v17 = vld [vmem:[%s1999_s20 + $0x18] sm:$0xff]  ;;  %v1451_v21 = vld [vmem:[%s1999_s20 + $0x10] sm:$0xff] }
  0x10   :  { %370 = vmatpush.bf16.msra.mxu0 %v1455_v4  ;;  %v1461_v13 = vld [vmem:[%s1999_s20 + $0x60] sm:$0xff]  ;;  %v1460_v18 = vld [vmem:[%s1999_s20 + $0x58] sm:$0xff]  ;;  %v1459_v22 = vld [vmem:[%s1999_s20 + $0x50] sm:$0xff] }
  0x11   :  { %383 = vmatpush.bf16.msra.mxu1 %v1463_v5  ;;  %v65_v14 = vld [vmem:[%s2000_s21] sm:$0x1f]  ;;  %v1468_v19 = vld [vmem:[%s1999_s20 + $0x98] sm:$0xff]  ;;  %v1467_v23 = vld [vmem:[%s1999_s20 + $0x90] sm:$0xff] }
  0x12   :  { %396 = vmatpush.bf16.msra.mxu2 %v1471_v6  ;;  %v1469_v15 = vld [vmem:[%s1999_s20 + $0xa0] sm:$0xff]  ;;  %140 = vst [vmem:[#allocation1] ss:$9 sm:$0xff] %v65_v14  ;;  %v1476_v20 = vld [vmem:[%s1999_s20 + $0xd8] sm:$0xff]  ;;  %v1475_v24 = vld [vmem:[%s1999_s20 + $0xd0] sm:$0xff] }
  0x13   :  { %409 = vmatpush.bf16.msra.mxu3 %v1479_v7  ;;  %v1477_v16 = vld [vmem:[%s1999_s20 + $0xe0] sm:$0xff]  ;;  %v1450_v25 = vld [vmem:[%s1999_s20 + $0x8] sm:$0xff]  ;;  %v1484_v33 = vld [vmem:[%s1999_s20 + $0x118] sm:$0xff] }
  0x14   :  { %371 = vmatpush.bf16.msra.mxu0 %v1454_v8  ;;  %v1458_v26 = vld [vmem:[%s1999_s20 + $0x48] sm:$0xff]  ;;  %v1449_v29 = vld [vmem:[%s1999_s20] sm:$0xff]  ;;  %v1483_v38 = vld [vmem:[%s1999_s20 + $0x110] sm:$0xff] }
  0x15   :  { %384 = vmatpush.bf16.msra.mxu1 %v1462_v9  ;;  %v1466_v27 = vld [vmem:[%s1999_s20 + $0x88] sm:$0xff]  ;;  %v1457_v30 = vld [vmem:[%s1999_s20 + $0x40] sm:$0xff]  ;;  %v1492_v41 = vld [vmem:[%s2001_s24 + $0x38] sm:$0xff] }
  0x16   :  { %397 = vmatpush.bf16.msra.mxu2 %v1470_v10  ;;  %v1474_v28 = vld [vmem:[%s1999_s20 + $0xc8] sm:$0xff]  ;;  %v1465_v31 = vld [vmem:[%s1999_s20 + $0x80] sm:$0xff]  ;;  %v1491_v43 = vld [vmem:[%s2001_s24 + $0x30] sm:$0xff] }
  0x17   :  { %410 = vmatpush.bf16.msra.mxu3 %v1478_v11  ;;  %v1473_v32 = vld [vmem:[%s1999_s20 + $0xc0] sm:$0xff]  ;;  %v1482_v39 = vld [vmem:[%s1999_s20 + $0x108] sm:$0xff]  ;;  %v1488_v46 = vld [vmem:[%s2001_s24 + $0x18] sm:$0xff] }
  0x18   :  { %372 = vmatpush.bf16.msra.mxu0 %v1453_v12  ;;  %v1481_v40 = vld [vmem:[%s1999_s20 + $0x100] sm:$0xff]  ;;  %v1490_v44 = vld [vmem:[%s2001_s24 + $0x28] sm:$0xff]  ;;  %v1487_v47 = vld [vmem:[%s2001_s24 + $0x10] sm:$0xff] }
  0x19   :  { %385 = vmatpush.bf16.msra.mxu1 %v1461_v13  ;;  %v141_v34 = vld [vmem:[#allocation1] sm:$0xff]  ;;  %v142_v35 = vld [vmem:[#allocation1 + $0x9] sm:$0xff]  ;;  %v143_v36 = vld [vmem:[#allocation1 + $0x12] sm:$0xff] }
  0x1a   :  { %398 = vmatpush.bf16.msra.mxu2 %v1469_v15  ;;  %v144_v37 = vld [vmem:[#allocation1 + $0x1b] sm:$0xff]  ;;  %v145_v42 = vld [vmem:[#allocation1 + $0x24] sm:$0xff]  ;;  %v1499_v51 = vld [vmem:[%s2002_s26 + $0x30] sm:$0xff] }
  0x1b   :  { %411 = vmatpush.bf16.msra.mxu3 %v1477_v16  ;;  %v1489_v45 = vld [vmem:[%s2001_s24 + $0x20] sm:$0xff]  ;;  %v1486_v48 = vld [vmem:[%s2001_s24 + $0x8] sm:$0xff]  ;;  %v1500_v50 = vld [vmem:[%s2002_s26 + $0x38] sm:$0xff] }
  0x1c   :  { %373 = vmatpush.bf16.msra.mxu0 %v1452_v17  ;;  %v1485_v49 = vld [vmem:[%s2001_s24] sm:$0xff]  ;;  %v1498_v52 = vld [vmem:[%s2002_s26 + $0x28] sm:$0xff]  ;;  %v1496_v58 = vld [vmem:[%s2002_s26 + $0x18] sm:$0xff] }
  0x1d   :  { %386 = vmatpush.bf16.msra.mxu1 %v1460_v18  ;;  %v1497_v56 = vld [vmem:[%s2002_s26 + $0x20] sm:$0xff]  ;;  %v1495_v0 = vld [vmem:[%s2002_s26 + $0x10] sm:$0xff]  ;;  %v1494_v10 = vld [vmem:[%s2002_s26 + $0x8] sm:$0xff] }
  0x1e   :  { %399 = vmatpush.bf16.msra.mxu2 %v1468_v19  ;;  %v1493_v11 = vld [vmem:[%s2002_s26] sm:$0xff]  ;;  %v1508_v12 = vld [vmem:[%s1977_s8 + $0x38] sm:$0xff]  ;;  %v1507_v13 = vld [vmem:[%s1977_s8 + $0x30] sm:$0xff] }
  0x1f   :  { %412 = vmatpush.bf16.msra.mxu3 %v1476_v20  ;;  %v1506_v14 = vld [vmem:[%s1977_s8 + $0x28] sm:$0xff]  ;;  %v1505_v15 = vld [vmem:[%s1977_s8 + $0x20] sm:$0xff]  ;;  %v1504_v16 = vld [vmem:[%s1977_s8 + $0x18] sm:$0xff] }
  0x20   :  { %374 = vmatpush.bf16.msra.mxu0 %v1451_v21  ;;  %v1503_v17 = vld [vmem:[%s1977_s8 + $0x10] sm:$0xff]  ;;  %v452_v18 = vld [vmem:[%s1978_s5] sm:$0x1] }
  0x21   :  { %387 = vmatpush.bf16.msra.mxu1 %v1459_v22 }
  0x22   :  { %400 = vmatpush.bf16.msra.mxu2 %v1467_v23 }
  0x23   :  { %413 = vmatpush.bf16.msra.mxu3 %v1475_v24  ;;  %v1502_v24 = vld [vmem:[%s1977_s8 + $0x8] sm:$0xff] }
  0x24   :  { %375 = vmatpush.bf16.msra.mxu0 %v1450_v25  ;;  %v1501_v25 = vld [vmem:[%s1977_s8] sm:$0xff] }
  0x25   :  { %388 = vmatpush.bf16.msra.mxu1 %v1458_v26  ;;  %v1516_v26 = vld [vmem:[%s1979_s10 + $0x38] sm:$0xff] }
  0x26   :  { %401 = vmatpush.bf16.msra.mxu2 %v1466_v27  ;;  %v1520_v27 = vld [vmem:[%s1980_s11 + $0x18] sm:$0xff] }
  0x27   :  { %414 = vmatpush.bf16.msra.mxu3 %v1474_v28  ;;  %v1515_v28 = vld [vmem:[%s1979_s10 + $0x30] sm:$0xff] }
  0x28   :  { %376 = vmatpush.bf16.msra.mxu0 %v1449_v29  ;;  %v1519_v29 = vld [vmem:[%s1980_s11 + $0x10] sm:$0xff] }
  0x29   :  { %389 = vmatpush.bf16.msra.mxu1 %v1457_v30  ;;  %v1514_v30 = vld [vmem:[%s1979_s10 + $0x28] sm:$0xff] }
  0x2a   :  { %402 = vmatpush.bf16.msra.mxu2 %v1465_v31  ;;  %v1518_v31 = vld [vmem:[%s1980_s11 + $0x8] sm:$0xff] }
  0x2b   :  { %415 = vmatpush.bf16.msra.mxu3 %v1473_v32  ;;  %377 = vmatmul.bf16.vlgmr.msra.gmra.mxu0 %v141_v34  ;;  %v1513_v32 = vld [vmem:[%s1979_s10 + $0x20] sm:$0xff]  ;;  %v1512_v34 = vld [vmem:[%s1979_s10 + $0x18] sm:$0xff] }
  0x2c   :  { %390 = vmatmul.bf16.vlgmr.msra.gmra.mxu1 %v142_v35  ;;  %739 = vmatpush.bf16.msrb.mxu0 %v1516_v26  ;;  %v752_v35 = vld [vmem:[%s1981_s1] sm:$0x1]  ;;  %v24_v26 = vstv %s1990_s18 }
  0x2d   :  { %425 = vmatpush.bf16.msrb.mxu1 %v1484_v33  ;;  %403 = vmatmul.bf16.vlgmr.msra.gmra.mxu2 %v143_v36  ;;  %v1517_v33 = vld [vmem:[%s1980_s11] sm:$0xff]  ;;  %v1511_v36 = vld [vmem:[%s1979_s10 + $0x10] sm:$0xff]  ;;  %25 = vst [vmem:[#allocation2] sm:$0x1] %v24_v26 }
  0x2e   :  { %416 = vmatmul.bf16.vlgmr.msra.gmra.mxu3 %v144_v37  ;;  %581 = vmatpush.bf16.msrb.mxu2 %v1500_v50  ;;  %v532_v37 = vld [vmem:[%s1982_s7] sm:$0x1] }
  0x2f   :  { %661 = vmatpush.bf16.msrb.mxu3 %v1508_v12  ;;  %v1544_v12 = vld [vmem:[%s1989_s17 + $0x38] sm:$0xff] }
  0x30   :  { %740 = vmatpush.bf16.msrb.mxu0 %v1515_v28 }
  0x31   :  { %426 = vmatpush.bf16.msrb.mxu1 %v1483_v38  ;;  %v1510_v38 = vld [vmem:[%s1979_s10 + $0x8] sm:$0xff] }
  0x32   :  { %582 = vmatpush.bf16.msrb.mxu2 %v1499_v51  ;;  %v1524_v51 = vld [vmem:[%s1984_s13 + $0x18] sm:$0xff] }
  0x33   :  { %662 = vmatpush.bf16.msrb.mxu3 %v1507_v13  ;;  %v1543_v13 = vld [vmem:[%s1989_s17 + $0x30] sm:$0xff] }
  0x34   :  { %741 = vmatpush.bf16.msrb.mxu0 %v1514_v30 }
  0x35   :  { %427 = vmatpush.bf16.msrb.mxu1 %v1482_v39 }
  0x36   :  { %583 = vmatpush.bf16.msrb.mxu2 %v1498_v52  ;;  %v612_v52 = vld [vmem:[%s1985_s9] sm:$0x1] }
  0x37   :  { %663 = vmatpush.bf16.msrb.mxu3 %v1506_v14  ;;  %v1542_v14 = vld [vmem:[%s1989_s17 + $0x28] sm:$0xff] }
  0x38   :  { %742 = vmatpush.bf16.msrb.mxu0 %v1513_v32 }
  0x39   :  { %428 = vmatpush.bf16.msrb.mxu1 %v1481_v40 }
  0x3a   :  { %584 = vmatpush.bf16.msrb.mxu2 %v1497_v56 }
  0x3b   :  { %664 = vmatpush.bf16.msrb.mxu3 %v1505_v15  ;;  %v1541_v15 = vld [vmem:[%s1989_s17 + $0x20] sm:$0xff] }
  0x3c   :  { %1207 = vmatmul.msk.bf16.vlgmr.msrb.gmra.mxu1 %vm366_vm0, %v145_v42  ;;  %743 = vmatpush.bf16.msrb.mxu0 %v1512_v34 }
  0x3d   :  { %501 = vmatpush.bf16.msra.mxu1 %v1492_v41 }
  0x3e   :  { %585 = vmatpush.bf16.msrb.mxu2 %v1496_v58  ;;  %v1522_v58 = vld [vmem:[%s1984_s13 + $0x8] sm:$0xff] }
  0x3f   :  { %665 = vmatpush.bf16.msrb.mxu3 %v1504_v16  ;;  %v1540_v16 = vld [vmem:[%s1989_s17 + $0x18] sm:$0xff] }
  0x40   :  { %744 = vmatpush.bf16.msrb.mxu0 %v1511_v36 }
  0x41   :  { %502 = vmatpush.bf16.msra.mxu1 %v1491_v43 }
  0x42   :  { %586 = vmatpush.bf16.msrb.mxu2 %v1495_v0  ;;  %v1532_v0 = vld [vmem:[%s1987_s15 + $0x18] sm:$0xff] }
  0x43   :  { %666 = vmatpush.bf16.msrb.mxu3 %v1503_v17  ;;  %v1539_v17 = vld [vmem:[%s1989_s17 + $0x10] sm:$0xff] }
  0x44   :  { %745 = vmatpush.bf16.msrb.mxu0 %v1510_v38 }
  0x45   :  { %503 = vmatpush.bf16.msra.mxu1 %v1490_v44  ;;  %v1509_v44 = vld [vmem:[%s1979_s10] sm:$0xff] }
  0x46   :  { %587 = vmatpush.bf16.msrb.mxu2 %v1494_v10  ;;  %v1530_v10 = vld [vmem:[%s1987_s15 + $0x8] sm:$0xff] }
  0x47   :  { %667 = vmatpush.bf16.msrb.mxu3 %v1502_v24  ;;  %v1538_v24 = vld [vmem:[%s1989_s17 + $0x8] sm:$0xff] }
  0x48   :  { %746 = vmatpush.bf16.msrb.mxu0 %v1509_v44 }
  0x49   :  { %504 = vmatpush.bf16.msra.mxu1 %v1489_v45  ;;  %v1528_v45 = vld [vmem:[%s1984_s13 + $0x38] sm:$0xff] }
  0x4a   :  { %588 = vmatpush.bf16.msrb.mxu2 %v1493_v11  ;;  %v1529_v11 = vld [vmem:[%s1987_s15] sm:$0xff] }
  0x4b   :  { %668 = vmatpush.bf16.msrb.mxu3 %v1501_v25  ;;  %v1537_v25 = vld [vmem:[%s1989_s17] sm:$0xff] }
  0x4c   :  { %1044 = vmatpush.bf16.msra.mxu0 %v1544_v12 }
  0x4d   :  { %505 = vmatpush.bf16.msra.mxu1 %v1488_v46  ;;  %v1527_v46 = vld [vmem:[%s1984_s13 + $0x30] sm:$0xff] }
  0x4e   :  { %878 = vmatpush.bf16.msra.mxu2 %v1528_v45 }
  0x50   :  { %1045 = vmatpush.bf16.msra.mxu0 %v1543_v13 }
  0x51   :  { %506 = vmatpush.bf16.msra.mxu1 %v1487_v47 }
  0x52   :  { %879 = vmatpush.bf16.msra.mxu2 %v1527_v46 }
  0x54   :  { %1046 = vmatpush.bf16.msra.mxu0 %v1542_v14 }
  0x55   :  { %507 = vmatpush.bf16.msra.mxu1 %v1486_v48  ;;  %v1526_v48 = vld [vmem:[%s1984_s13 + $0x28] sm:$0xff] }
  0x56   :  { %880 = vmatpush.bf16.msra.mxu2 %v1526_v48 }
  0x58   :  { %1047 = vmatpush.bf16.msra.mxu0 %v1541_v15 }
  0x59   :  { %508 = vmatpush.bf16.msra.mxu1 %v1485_v49  ;;  %v1525_v49 = vld [vmem:[%s1984_s13 + $0x20] sm:$0xff] }
  0x5a   :  { %881 = vmatpush.bf16.msra.mxu2 %v1525_v49 }
  0x5c   :  { %1048 = vmatpush.bf16.msra.mxu0 %v1540_v16 }
  0x5d   :  { %792 = vmatpush.bf16.msrb.mxu1 %v1520_v27  ;;  %v1547_v27 = vld [vmem:[%s1988_s16] ss:$0 sm:$0xff] }
  0x5e   :  { %882 = vmatpush.bf16.msra.mxu2 %v1524_v51 }
  0x60   :  { %1049 = vmatpush.bf16.msra.mxu0 %v1539_v17 }
  0x61   :  { %793 = vmatpush.bf16.msrb.mxu1 %v1519_v29 }
  0x64   :  { %1050 = vmatpush.bf16.msra.mxu0 %v1538_v24 }
  0x65   :  { %794 = vmatpush.bf16.msrb.mxu1 %v1518_v31 }
  0x68   :  { %1051 = vmatpush.bf16.msra.mxu0 %v1537_v25 }
  0x69   :  { %795 = vmatpush.bf16.msrb.mxu1 %v1517_v33  ;;  %v1548_v33 = vld [vmem:[#allocation2] ss:$0 sm:$0xff] }
  0xa8   :  { %v378_v53 = vpop.f32.mrf.mxu0 }
  0xa9   :  { %v391_v54 = vpop.f32.mrf.mxu1  ;;  %v379_v57 = vadd.f32 %v378_v53, %v138_v55 }
  0xab   :  { %v392_v63 = vadd.f32 %v391_v54, %v379_v57  ;;  %v1523_v57 = vld [vmem:[%s1984_s13 + $0x10] sm:$0xff] }
  0xac   :  { %883 = vmatpush.bf16.msra.mxu2 %v1523_v57 }
  0xb0   :  { %v404_v59 = vpop.f32.mrf.mxu2  ;;  %v380_v61 = vpop.f32.mrf.mxu0  ;;  %884 = vmatpush.bf16.msra.mxu2 %v1522_v58 }
  0xb1   :  { %v417_v60 = vpop.f32.mrf.mxu3  ;;  %v393_v62 = vpop.f32.mrf.mxu1  ;;  %v405_v1 = vadd.f32 %v404_v59, %v392_v63  ;;  %v1521_v59 = vld [vmem:[%s1984_s13] sm:$0xff]  ;;  %v1535_v61 = vld [vmem:[%s1987_s15 + $0x30] sm:$0xff] }
  0xb2   :  { %v1534_v62 = vld [vmem:[%s1987_s15 + $0x28] sm:$0xff]  ;;  %v1533_v63 = vld [vmem:[%s1987_s15 + $0x20] sm:$0xff] }
  0xb3   :  { %v418_v2 = vadd.f32 %v417_v60, %v405_v1  ;;  %v1536_v60 = vld [vmem:[%s1987_s15 + $0x38] sm:$0xff]  ;;  %v1531_v1 = vld [vmem:[%s1987_s15 + $0x10] sm:$0xff] }
  0xb4   :  { %885 = vmatpush.bf16.msra.mxu2 %v1521_v59  ;;  %961 = vmatpush.bf16.msra.mxu3 %v1536_v60 }
  0xb8   :  { %v406_v3 = vpop.f32.mrf.mxu2  ;;  %962 = vmatpush.bf16.msra.mxu3 %v1535_v61 }
  0xb9   :  { %v419_v4 = vpop.f32.mrf.mxu3  ;;  %v430_v5 = vpop.f32.mrf.mxu1 }
  0xba   :  { %v431_v6 = vadd.f32 %v430_v5, %v418_v2  ;;  %v1545_v4 = vld [vmem:[%s1983_s12] ss:$0 sm:$0xff] }
  0xbc   :  { %v434_v7 = vmax.f32 %v431_v6, 0.0  ;;  %963 = vmatpush.bf16.msra.mxu3 %v1534_v62 }
  0xbe   :  { %v435_v8 = vpack.c.bf16 %v434_v7, %v434_v7 }
  0xc0   :  { %509 = vmatmul.bf16.vlgmr.msra.gmra.mxu1 %v435_v8  ;;  %964 = vmatpush.bf16.msra.mxu3 %v1533_v63 }
  0xc1   :  { %v432_v9 = vpop.f32.mrf.mxu1 }
  0xc4   :  { %965 = vmatpush.bf16.msra.mxu3 %v1532_v0 }
  0xc8   :  { %966 = vmatpush.bf16.msra.mxu3 %v1531_v1 }
  0xcc   :  { %967 = vmatpush.bf16.msra.mxu3 %v1530_v10 }
  0xd0   :  { %1352 = vmatmul.msk.bf16.vlgmr.msrb.gmra.mxu1 %vm366_vm0, %v752_v35  ;;  %968 = vmatpush.bf16.msra.mxu3 %v1529_v11 }
 0x13d   :  { %v510_v19 = vpop.f32.mrf.mxu1 }
 0x13e   :  { %v511_v20 = vadd.f32 %v510_v19, %v452_v18  ;;  %v1546_v18 = vld [vmem:[%s1986_s14] ss:$0 sm:$0xff] }
 0x140   :  { %v514_v21 = vmax.f32 %v511_v20, 0.0 }
 0x142   :  { %v515_v22 = vpack.c.bf16 %v514_v21, %v514_v21 }
 0x144   :  { %589 = vmatmul.bf16.vlgmr.msrb.gmra.mxu2 %v515_v22 }
 0x145   :  { %v512_v23 = vpop.f32.mrf.mxu1 }
 0x14d   :  { %v797_v47 = vpop.f32.mrf.mxu1 }
 0x155   :  { %v799_v50 = vpop.f32.mrf.mxu1 }
 0x1c7   :  { %v590_v39 = vpop.f32.mrf.mxu2 }
 0x1c8   :  { %v591_v40 = vadd.f32 %v590_v39, %v532_v37 }
 0x1ca   :  { %v594_v41 = vmax.f32 %v591_v40, 0.0 }
 0x1cc   :  { %v595_v42 = vpack.c.bf16 %v594_v41, %v594_v41 }
 0x1ce   :  { %669 = vmatmul.bf16.vlgmr.msrb.gmra.mxu3 %v595_v42 }
 0x1cf   :  { %v592_v43 = vpop.f32.mrf.mxu2 }
 0x251   :  { %v670_v53 = vpop.f32.mrf.mxu3 }
 0x252   :  { %v671_v54 = vadd.f32 %v670_v53, %v612_v52 }
 0x254   :  { %v674_v55 = vpack.c.bf16 %v671_v54, %v671_v54 }
 0x256   :  { %747 = vmatmul.bf16.vlgmr.msrb.gmra.mxu0 %v674_v55 }
 0x259   :  { %v672_v56 = vpop.f32.mrf.mxu3 }
 0x2d3   :  { %v748_v2 = vpop.f32.mrf.mxu0 }
 0x2d4   :  { %v801_v3 = vperm.slane %v748_v2, 0 }
 0x2d6   :  { %v802_v5 = vadd.f32 %v801_v3, %v797_v47 }
 0x2d8   :  { %v807_v6 = vadd.f32 %v1545_v4, %v802_v5 }
 0x2da   :  { %v808_v7 = vmax.f32 %v807_v6, 0.0 }
 0x2db   :  { %v750_v8 = vpop.f32.mrf.mxu0 }
 0x2dc   :  { %v809_v9 = vpack.c.bf16 %v808_v7, %v808_v7 }
 0x2de   :  { %886 = vmatmul.bf16.vlgmr.msra.gmra.mxu2 %v809_v9 }
 0x361   :  { %v887_v19 = vpop.f32.mrf.mxu2 }
 0x362   :  { %v888_v20 = vadd.f32 %v1546_v18, %v887_v19 }
 0x364   :  { %v891_v21 = vmax.f32 %v888_v20, 0.0 }
 0x366   :  { %v892_v22 = vpack.c.bf16 %v891_v21, %v891_v21 }
 0x368   :  { %969 = vmatmul.bf16.vlgmr.msra.gmra.mxu3 %v892_v22 }
 0x369   :  { %v889_v23 = vpop.f32.mrf.mxu2 }
 0x3eb   :  { %v970_v28 = vpop.f32.mrf.mxu3 }
 0x3ec   :  { %v971_v29 = vadd.f32 %v1547_v27, %v970_v28 }
 0x3ee   :  { %v974_v30 = vmax.f32 %v971_v29, 0.0 }
 0x3f0   :  { %v975_v31 = vpack.c.bf16 %v974_v30, %v974_v30 }
 0x3f2   :  { %1052 = vmatmul.bf16.vlgmr.msra.gmra.mxu0 %v975_v31 }
 0x3f3   :  { %v972_v32 = vpop.f32.mrf.mxu3 }
 0x46f   :  { %v1053_v34 = vpop.f32.mrf.mxu0 }
 0x470   :  { %v1054_v35 = vadd.f32 %v1548_v33, %v1053_v34 }
 0x472   :  { %1058 = vst.msk [vmem:[%s1991_s19] sm:$0x3] %vm1057_vm1, %v1054_v35 }
 0x477   :  { %v1055_v36 = vpop.f32.mrf.mxu0 }

</bundles_post_ra>
